<compile_context>
chip_gen: v7x
topology: tpu7x:2x2x1
jax: 0.10.0
libtpu: 0.0.40
codegen_flags: <defaults>
</compile_context>

<pallas_src>
import functools

import jax
import jax.numpy as jnp
from jax.experimental import pallas as pl
from jax.experimental.pallas import tpu as pltpu


def _round_up(v, m):
    return -(-v // m) * m


def _bf16_elementwise_default():
    """bf16 bias-add/ReLU on chips with bf16 VALUs (v6e/v7x); f32 otherwise."""
    try:
        kind = jax.devices()[0].device_kind.lower()
    except Exception:
        return False
    return any(tag in kind for tag in ("v6", "v7", "7x"))


def _box_predictor_kernel(x_ref, w1_ref, b1_ref, w2_ref, b2_ref,
                          w3_ref, b3_ref, wh_ref, bh_ref, out_ref, *, ew_dtype):
    def dense_relu(h_bf16, w_ref, b_ref):
        # MXU matmul: bf16 operands, f32 accumulation.
        acc = jnp.dot(h_bf16, w_ref[...], preferred_element_type=jnp.float32)
        # Bias + ReLU (dropout == identity in eval mode).  The bf16 down-cast
        # is fused here so only one copy of each intermediate is materialized.
        act = jnp.maximum(acc.astype(ew_dtype) + b_ref[...].astype(ew_dtype), 0.0)
        return act.astype(jnp.bfloat16)

    h = dense_relu(x_ref[...].astype(jnp.bfloat16), w1_ref, b1_ref)
    h = dense_relu(h, w2_ref, b2_ref)
    h = dense_relu(h, w3_ref, b3_ref)

    # Fused heads: [cls_score | bbox_pred | zero-pad] -> one lane-dense store.
    out = jnp.dot(h, wh_ref[...], preferred_element_type=jnp.float32)
    out_ref[...] = (out + bh_ref[...]).astype(out_ref.dtype)


def prepack_params(params):
    """One-time weight prepack, hoisted out of the per-call forward.

    `params` uses (in_features, out_features) weights (transposed vs PyTorch)
    and (1, out_features) biases.  Matmul weights become bf16; the two heads
    are fused and zero-padded to a lane-dense width (multiple of 128 lanes).
    """
    num_classes = params["wc"].shape[1]
    head_dim = 5 * num_classes
    head_pad = _round_up(head_dim, 128)
    wh = jnp.concatenate([params["wc"], params["wb"]], axis=1)
    bh = jnp.concatenate([params["bc"], params["bb"]], axis=1)
    return {
        "w1": params["w1"].astype(jnp.bfloat16),
        "b1": params["b1"].astype(jnp.float32),
        "w2": params["w2"].astype(jnp.bfloat16),
        "b2": params["b2"].astype(jnp.float32),
        "w3": params["w3"].astype(jnp.bfloat16),
        "b3": params["b3"].astype(jnp.float32),
        "wh": jnp.pad(wh, ((0, 0), (0, head_pad - head_dim))).astype(jnp.bfloat16),
        "bh": jnp.pad(bh, ((0, 0), (0, head_pad - head_dim))).astype(jnp.float32),
    }


def _choose_block_m(n, in_ch, d1, d2, d3, head_pad, requested,
                    x_itemsize, out_itemsize, weight_bytes):
    n8 = _round_up(n, 8)
    bm = max(8, min(_round_up(requested, 8), n8))
    # Keep the grid >= 2 steps when there is enough work: v7x has 2 TCs and
    # dimension_semantics=("parallel",) shards the batch axis across them.
    if n8 <= bm and n >= 512:
        bm = _round_up(-(-n8 // 2), 8)

    def footprint(b):
        tiles = 2 * b * in_ch * x_itemsize + 2 * b * head_pad * out_itemsize
        interm = b * (d1 + d2 + d3) * 6          # f32 accumulator + bf16 copy
        return tiles + interm + 2 * weight_bytes  # inputs are double-buffered

    budget = 48 * 1024 * 1024                     # v7x-safe (64 MiB physical)
    while footprint(bm) > budget and bm > 8:
        bm = max(8, _round_up(bm // 2, 8))
    return bm, footprint(bm)


@functools.partial(
    jax.jit,
    static_argnames=("num_classes", "block_m", "elementwise_bf16", "out_dtype"))
def _forward(x, packed, *, num_classes, block_m, elementwise_bf16, out_dtype):
    n, in_ch = x.shape
    d1 = packed["w1"].shape[1]
    d2 = packed["w2"].shape[1]
    d3 = packed["w3"].shape[1]
    head_pad = packed["wh"].shape[1]
    head_dim = 5 * num_classes

    # For wide (ROI-pooled-size) inputs, halve the activation DMA.
    if in_ch >= 1024:
        x = x.astype(jnp.bfloat16)

    weight_bytes = sum(v.size * v.dtype.itemsize for v in packed.values())
    out_itemsize = jnp.dtype(out_dtype).itemsize
    bm, vmem_footprint = _choose_block_m(
        n, in_ch, d1, d2, d3, head_pad, block_m,
        x.dtype.itemsize, out_itemsize, weight_bytes)

    # Partial final block: OOB rows are independent and their writes masked.
    grid = (pl.cdiv(n, bm),)

    def full_spec(shape):
        # Constant index_map -> the tile is fetched once and stays resident.
        return pl.BlockSpec(shape, lambda i: (0, 0))

    flops = 2 * n * (in_ch * d1 + d1 * d2 + d2 * d3 + d3 * head_pad)
    bytes_accessed = (x.size * x.dtype.itemsize + weight_bytes
                      + n * head_pad * out_itemsize)

    kernel = functools.partial(
        _box_predictor_kernel,
        ew_dtype=jnp.bfloat16 if elementwise_bf16 else jnp.float32)

    vmem_limit = int(min(max(2 * vmem_footprint, 32 * 1024 * 1024),
                         64 * 1024 * 1024))

    out = pl.pallas_call(
        kernel,
        out_shape=jax.ShapeDtypeStruct((n, head_pad), out_dtype),
        grid_spec=pltpu.PrefetchScalarGridSpec(
            num_scalar_prefetch=0,
            grid=grid,
            in_specs=[
                pl.BlockSpec((bm, in_ch), lambda i: (i, 0)),
                full_spec(packed["w1"].shape), full_spec(packed["b1"].shape),
                full_spec(packed["w2"].shape), full_spec(packed["b2"].shape),
                full_spec(packed["w3"].shape), full_spec(packed["b3"].shape),
                full_spec(packed["wh"].shape), full_spec(packed["bh"].shape),
            ],
            out_specs=pl.BlockSpec((bm, head_pad), lambda i: (i, 0)),
        ),
        compiler_params=pltpu.CompilerParams(
            dimension_semantics=("parallel",),
            vmem_limit_bytes=vmem_limit,
        ),
        cost_estimate=pl.CostEstimate(
            flops=flops, transcendentals=0, bytes_accessed=bytes_accessed),
    )(x, packed["w1"], packed["b1"], packed["w2"], packed["b2"],
      packed["w3"], packed["b3"], packed["wh"], packed["bh"])

    cls_out = out[:, :num_classes]
    box_out = out[:, num_classes:head_dim]
    return cls_out, box_out


def new_box_predictor(x, packed_params, *, num_classes, block_m=512,
                      elementwise_bf16=None, out_dtype=jnp.float32):
    """Forward pass of NewBoxPredictor (eval mode).

    x: (N, in_channels) float32; packed_params: output of prepack_params().
    Returns (cls_score (N, C), bbox_pred (N, 4C)).
    """
    if elementwise_bf16 is None:
        elementwise_bf16 = _bf16_elementwise_default()
    return _forward(x, packed_params, num_classes=int(num_classes),
                    block_m=int(block_m),
                    elementwise_bf16=bool(elementwise_bf16),
                    out_dtype=out_dtype)


def init_params(key, in_channels, num_classes):
    """Deterministic synthetic parameter init (shapes match the nn.Linear layers)."""
    dims = [
        ("w1", "b1", in_channels, 1024),
        ("w2", "b2", 1024, 512),
        ("w3", "b3", 512, 256),
        ("wc", "bc", 256, num_classes),
        ("wb", "bb", 256, num_classes * 4),
    ]
    params = {}
    for wname, bname, fan_in, fan_out in dims:
        key, kw, kb = jax.random.split(key, 3)
        scale = 1.0 / jnp.sqrt(jnp.float32(fan_in))
        params[wname] = jax.random.uniform(
            kw, (fan_in, fan_out), jnp.float32, -scale, scale)
        params[bname] = jax.random.uniform(
            kb, (1, fan_out), jnp.float32, -scale, scale)
    return params


def reference_forward_f32(x, params):
    """Pure-JAX f32 reference (eval-mode dropout == identity)."""
    h = jnp.maximum(x @ params["w1"] + params["b1"], 0.0)
    h = jnp.maximum(h @ params["w2"] + params["b2"], 0.0)
    h = jnp.maximum(h @ params["w3"] + params["b3"], 0.0)
    return h @ params["wc"] + params["bc"], h @ params["wb"] + params["bb"]


def reference_forward_mixed(x, params, *, elementwise_bf16):
    """Pure-JAX reference mirroring the kernel's bf16-operand / f32-acc math."""
    bf = jnp.bfloat16
    ew = jnp.bfloat16 if elementwise_bf16 else jnp.float32

    def layer(h, w, b):
        acc = jnp.dot(h.astype(bf), w.astype(bf),
                      preferred_element_type=jnp.float32)
        return jnp.maximum(acc.astype(ew) + b.astype(ew), 0.0).astype(bf)

    h = layer(x, params["w1"], params["b1"])
    h = layer(h, params["w2"], params["b2"])
    h = layer(h, params["w3"], params["b3"])
    cls = jnp.dot(h, params["wc"].astype(bf),
                  preferred_element_type=jnp.float32) + params["bc"]
    box = jnp.dot(h, params["wb"].astype(bf),
                  preferred_element_type=jnp.float32) + params["bb"]
    return cls, box


if __name__ == "__main__":
    key = jax.random.PRNGKey(0)
    batch = 8
    in_channels = 32
    num_classes = 8

    key, kx, kp = jax.random.split(key, 3)
    x = jax.random.normal(kx, (batch, in_channels), jnp.float32)
    params = init_params(kp, in_channels, num_classes)

    packed = prepack_params(params)       # one-time prepack, reused per call
    packed = jax.block_until_ready(packed)

    ew_bf16 = _bf16_elementwise_default()
    cls_out, box_out = new_box_predictor(
        x, packed, num_classes=num_classes, elementwise_bf16=ew_bf16)
    jax.block_until_ready((cls_out, box_out))

    assert cls_out.shape == (batch, num_classes)
    assert box_out.shape == (batch, num_classes * 4)

    # Tight check against a reference using the same mixed-precision math.
    cls_ref, box_ref = reference_forward_mixed(x, params, elementwise_bf16=ew_bf16)
    assert jnp.allclose(cls_out, cls_ref, atol=5e-3, rtol=5e-3)
    assert jnp.allclose(box_out, box_ref, atol=5e-3, rtol=5e-3)

    # Loose check against the full-f32 reference (bf16 operand rounding).
    cls_f32, box_f32 = reference_forward_f32(x, params)
    assert jnp.allclose(cls_out, cls_f32, atol=5e-2, rtol=5e-2)
    assert jnp.allclose(box_out, box_f32, atol=5e-2, rtol=5e-2)

    print("KERNEL_OK")
</pallas_src>

<mosaic_0001>
module attributes {stable_mosaic.version = 11 : i64} {
  func.func @_box_predictor_kernel(%arg0: i32, %arg1: memref<8x32xf32, #tpu.memory_space<vmem>>, %arg2: memref<32x1024xbf16, #tpu.memory_space<vmem>>, %arg3: memref<1x1024xf32, #tpu.memory_space<vmem>>, %arg4: memref<1024x512xbf16, #tpu.memory_space<vmem>>, %arg5: memref<1x512xf32, #tpu.memory_space<vmem>>, %arg6: memref<512x256xbf16, #tpu.memory_space<vmem>>, %arg7: memref<1x256xf32, #tpu.memory_space<vmem>>, %arg8: memref<256x128xbf16, #tpu.memory_space<vmem>>, %arg9: memref<1x128xf32, #tpu.memory_space<vmem>>, %arg10: memref<8x128xf32, #tpu.memory_space<vmem>>) attributes {dimension_semantics = [#tpu.dimension_semantics<parallel>], iteration_bounds = array<i64: 1>, scalar_prefetch = 0 : i64, scratch_operands = 0 : i64, tpu.core_type = #tpu.core_type<tc>, window_params = [{transform_indices = @transform_0, window_bounds = array<i64: 8, 32>}, {pipeline_mode = #tpu.pipeline_mode<synchronous>, transform_indices = @transform_1, window_bounds = array<i64: 32, 1024>}, {pipeline_mode = #tpu.pipeline_mode<synchronous>, transform_indices = @transform_2, window_bounds = array<i64: 1, 1024>}, {pipeline_mode = #tpu.pipeline_mode<synchronous>, transform_indices = @transform_3, window_bounds = array<i64: 1024, 512>}, {pipeline_mode = #tpu.pipeline_mode<synchronous>, transform_indices = @transform_4, window_bounds = array<i64: 1, 512>}, {pipeline_mode = #tpu.pipeline_mode<synchronous>, transform_indices = @transform_5, window_bounds = array<i64: 512, 256>}, {pipeline_mode = #tpu.pipeline_mode<synchronous>, transform_indices = @transform_6, window_bounds = array<i64: 1, 256>}, {pipeline_mode = #tpu.pipeline_mode<synchronous>, transform_indices = @transform_7, window_bounds = array<i64: 256, 128>}, {pipeline_mode = #tpu.pipeline_mode<synchronous>, transform_indices = @transform_8, window_bounds = array<i64: 1, 128>}, {transform_indices = @transform_9, window_bounds = array<i64: 8, 128>}]} {
    %c0 = arith.constant 0 : index
    %c0_0 = arith.constant 0 : index
    %0 = vector.load %arg1[%c0, %c0_0] : memref<8x32xf32, #tpu.memory_space<vmem>>, vector<8x32xf32>
    %1 = arith.truncf %0 : vector<8x32xf32> to vector<8x32xbf16>
    %c0_1 = arith.constant 0 : index
    %c0_2 = arith.constant 0 : index
    %2 = vector.load %arg2[%c0_1, %c0_2] : memref<32x1024xbf16, #tpu.memory_space<vmem>>, vector<32x1024xbf16>
    %cst = arith.constant dense<0.000000e+00> : vector<8x1024xf32>
    %3 = tpu.matmul %1, %2, %cst {dimension_numbers = #tpu.dot_dimension_numbers<[1], [0], [0], [1], [0, 0, 1, 1], [], []>} : vector<8x32xbf16>, vector<32x1024xbf16>, vector<8x1024xf32> -> vector<8x1024xf32>
    %c0_3 = arith.constant 0 : index
    %c0_4 = arith.constant 0 : index
    %4 = vector.load %arg3[%c0_3, %c0_4] : memref<1x1024xf32, #tpu.memory_space<vmem>>, vector<1x1024xf32>
    %5 = vector.broadcast %4 : vector<1x1024xf32> to vector<8x1024xf32>
    %6 = arith.addf %3, %5 : vector<8x1024xf32>
    %cst_5 = arith.constant 0.000000e+00 : f32
    %7 = vector.broadcast %cst_5 : f32 to vector<8x1024xf32>
    %8 = arith.maximumf %6, %7 : vector<8x1024xf32>
    %9 = arith.truncf %8 : vector<8x1024xf32> to vector<8x1024xbf16>
    %c0_6 = arith.constant 0 : index
    %c0_7 = arith.constant 0 : index
    %10 = vector.load %arg4[%c0_6, %c0_7] : memref<1024x512xbf16, #tpu.memory_space<vmem>>, vector<1024x512xbf16>
    %cst_8 = arith.constant dense<0.000000e+00> : vector<8x512xf32>
    %11 = tpu.matmul %9, %10, %cst_8 {dimension_numbers = #tpu.dot_dimension_numbers<[1], [0], [0], [1], [0, 0, 1, 1], [], []>} : vector<8x1024xbf16>, vector<1024x512xbf16>, vector<8x512xf32> -> vector<8x512xf32>
    %c0_9 = arith.constant 0 : index
    %c0_10 = arith.constant 0 : index
    %12 = vector.load %arg5[%c0_9, %c0_10] : memref<1x512xf32, #tpu.memory_space<vmem>>, vector<1x512xf32>
    %13 = vector.broadcast %12 : vector<1x512xf32> to vector<8x512xf32>
    %14 = arith.addf %11, %13 : vector<8x512xf32>
    %cst_11 = arith.constant 0.000000e+00 : f32
    %15 = vector.broadcast %cst_11 : f32 to vector<8x512xf32>
    %16 = arith.maximumf %14, %15 : vector<8x512xf32>
    %17 = arith.truncf %16 : vector<8x512xf32> to vector<8x512xbf16>
    %c0_12 = arith.constant 0 : index
    %c0_13 = arith.constant 0 : index
    %18 = vector.load %arg6[%c0_12, %c0_13] : memref<512x256xbf16, #tpu.memory_space<vmem>>, vector<512x256xbf16>
    %cst_14 = arith.constant dense<0.000000e+00> : vector<8x256xf32>
    %19 = tpu.matmul %17, %18, %cst_14 {dimension_numbers = #tpu.dot_dimension_numbers<[1], [0], [0], [1], [0, 0, 1, 1], [], []>} : vector<8x512xbf16>, vector<512x256xbf16>, vector<8x256xf32> -> vector<8x256xf32>
    %c0_15 = arith.constant 0 : index
    %c0_16 = arith.constant 0 : index
    %20 = vector.load %arg7[%c0_15, %c0_16] : memref<1x256xf32, #tpu.memory_space<vmem>>, vector<1x256xf32>
    %21 = vector.broadcast %20 : vector<1x256xf32> to vector<8x256xf32>
    %22 = arith.addf %19, %21 : vector<8x256xf32>
    %cst_17 = arith.constant 0.000000e+00 : f32
    %23 = vector.broadcast %cst_17 : f32 to vector<8x256xf32>
    %24 = arith.maximumf %22, %23 : vector<8x256xf32>
    %25 = arith.truncf %24 : vector<8x256xf32> to vector<8x256xbf16>
    %c0_18 = arith.constant 0 : index
    %c0_19 = arith.constant 0 : index
    %26 = vector.load %arg8[%c0_18, %c0_19] : memref<256x128xbf16, #tpu.memory_space<vmem>>, vector<256x128xbf16>
    %cst_20 = arith.constant dense<0.000000e+00> : vector<8x128xf32>
    %27 = tpu.matmul %25, %26, %cst_20 {dimension_numbers = #tpu.dot_dimension_numbers<[1], [0], [0], [1], [0, 0, 1, 1], [], []>} : vector<8x256xbf16>, vector<256x128xbf16>, vector<8x128xf32> -> vector<8x128xf32>
    %c0_21 = arith.constant 0 : index
    %c0_22 = arith.constant 0 : index
    %28 = vector.load %arg9[%c0_21, %c0_22] : memref<1x128xf32, #tpu.memory_space<vmem>>, vector<1x128xf32>
    %29 = vector.broadcast %28 : vector<1x128xf32> to vector<8x128xf32>
    %30 = arith.addf %27, %29 : vector<8x128xf32>
    %c0_23 = arith.constant 0 : index
    %c0_24 = arith.constant 0 : index
    %31 = vector.load %arg10[%c0_23, %c0_24] : memref<8x128xf32, #tpu.memory_space<vmem>>, vector<8x128xf32>
    tpu.vector_store %arg10[%c0_23, %c0_24], %30 {strides = array<i32>} : memref<8x128xf32, #tpu.memory_space<vmem>>, vector<8x128xf32>,
    return
  }
  func.func @transform_0(%arg0: i32) -> (i32, i32) {
    %c0_i32 = arith.constant 0 : i32
    %c0_i32_0 = arith.constant 0 : i32
    return %arg0, %c0_i32 : i32, i32
  }
  func.func @transform_1(%arg0: i32) -> (i32, i32) {
    %c0_i32 = arith.constant 0 : i32
    %c0_i32_0 = arith.constant 0 : i32
    %c0_i32_1 = arith.constant 0 : i32
    return %c0_i32, %c0_i32_0 : i32, i32
  }
  func.func @transform_2(%arg0: i32) -> (i32, i32) {
    %c0_i32 = arith.constant 0 : i32
    %c0_i32_0 = arith.constant 0 : i32
    %c0_i32_1 = arith.constant 0 : i32
    return %c0_i32, %c0_i32_0 : i32, i32
  }
  func.func @transform_3(%arg0: i32) -> (i32, i32) {
    %c0_i32 = arith.constant 0 : i32
    %c0_i32_0 = arith.constant 0 : i32
    %c0_i32_1 = arith.constant 0 : i32
    return %c0_i32, %c0_i32_0 : i32, i32
  }
  func.func @transform_4(%arg0: i32) -> (i32, i32) {
    %c0_i32 = arith.constant 0 : i32
    %c0_i32_0 = arith.constant 0 : i32
    %c0_i32_1 = arith.constant 0 : i32
    return %c0_i32, %c0_i32_0 : i32, i32
  }
  func.func @transform_5(%arg0: i32) -> (i32, i32) {
    %c0_i32 = arith.constant 0 : i32
    %c0_i32_0 = arith.constant 0 : i32
    %c0_i32_1 = arith.constant 0 : i32
    return %c0_i32, %c0_i32_0 : i32, i32
  }
  func.func @transform_6(%arg0: i32) -> (i32, i32) {
    %c0_i32 = arith.constant 0 : i32
    %c0_i32_0 = arith.constant 0 : i32
    %c0_i32_1 = arith.constant 0 : i32
    return %c0_i32, %c0_i32_0 : i32, i32
  }
  func.func @transform_7(%arg0: i32) -> (i32, i32) {
    %c0_i32 = arith.constant 0 : i32
    %c0_i32_0 = arith.constant 0 : i32
    %c0_i32_1 = arith.constant 0 : i32
    return %c0_i32, %c0_i32_0 : i32, i32
  }
  func.func @transform_8(%arg0: i32) -> (i32, i32) {
    %c0_i32 = arith.constant 0 : i32
    %c0_i32_0 = arith.constant 0 : i32
    %c0_i32_1 = arith.constant 0 : i32
    return %c0_i32, %c0_i32_0 : i32, i32
  }
  func.func @transform_9(%arg0: i32) -> (i32, i32) {
    %c0_i32 = arith.constant 0 : i32
    %c0_i32_0 = arith.constant 0 : i32
    return %arg0, %c0_i32 : i32, i32
  }
}

</mosaic_0001>

<bundles_post_ra>
// kernel: _forward.1
= control target key start
LH: loop header
LB: loop body
LE: loop exit
PB: predicated region body
PF: predicated region fallthrough
CT: control target
= control target key end

     0   :  { %14 = vsyncpa [#allocation3], 0  ;;  %s4301_s0 = inlined_call_operand.hbm [shape: f32[8,32], index: 0, kind: input, shape index: {}]   ;;  %s4302_s1 = inlined_call_operand.hbm [shape: bf16[32,1024], index: 1, kind: input, shape index: {}]   ;;  %s4303_s2 = inlined_call_operand.hbm [shape: f32[1,1024], index: 2, kind: input, shape index: {}]   ;;  %s4304_s3 = inlined_call_operand.hbm [shape: bf16[1024,512], index: 3, kind: input, shape index: {}]   ;;  %s4305_s4 = inlined_call_operand.vmem [shape: f32[1,512], index: 4, kind: input, shape index: {}]   ;;  %s4306_s5 = inlined_call_operand.hbm [shape: bf16[512,256], index: 5, kind: input, shape index: {}]   ;;  %s4307_s6 = inlined_call_operand.vmem [shape: f32[1,256], index: 6, kind: input, shape index: {}]   ;;  %s4308_s7 = inlined_call_operand.hbm [shape: bf16[256,128], index: 7, kind: input, shape index: {}]   ;;  %s4309_s8 = inlined_call_operand.vmem [shape: f32[1,128], index: 8, kind: input, shape index: {}]   ;;  %s4310_s9 = inlined_call_operand.vmem [shape: f32[8,128], index: 9, kind: output, shape index: {}]  }
   0x1   :  { %15 = vsyncpa [#allocation5], 0 }
   0x2   :  { %16 = vsyncpa [#allocation8], 0 }
   0x3   :  { %17 = vsyncpa [#allocation11], 0  ;;  %s4057_s30 = smov [#allocation4]   ;;  %s3917_s13 = scalar_lea.hbm %s4302_s1, 2048 }
   0x4   :  { %s33_s10 = sshll.u32 %s4057_s30, 4  ;;  %p3918_p0 = scmp.ne.s32.totalorder %s4302_s1, %s3917_s13  ;;  %s34_s10 = int_to_ptr.vmem [resolvable:$true] %s33_s10 }
   0x5   :  { %p3921_p1 = scmp.lt.u32.totalorder %s3917_s13, %s4302_s1 }
   0x7   :  { %p3923_p2 = pnand %p3921_p1, %p3918_p0 }
   0x9   :  { %3926 = shalt.err (!%p3923_p2)
}
   0xa   :  { %s3927_s18 = scalar_lea.vmem %s34_s10, 2048  ;;  %p3932_p4 = scmp.lt.s32.totalorder %s34_s10, %s34_s10 }
   0xb   :  { %p3928_p3 = scmp.ne.s32.totalorder %s34_s10, %s3927_s18  ;;  %p3933_p5 = scmp.lt.s32.totalorder %s3927_s18, %s3927_s18 }
   0xd   :  { %p3934_p6 = por %p3933_p5, %p3932_p4 }
   0xf   :  { %p3935_p7 = pnand %p3934_p6, %p3928_p3 }
  0x11   :  { %3938 = shalt.err (!%p3935_p7)
}
  0x12   :  { %s4058_s19 = smov 512   ;;  %s4059_s20 = smov 32  }
  0x13   :  { %39 = dma.hbm_to_vmem [thread:$0]  %s4302_s1, 2048, %s34_s10, [#allocation5], %s4058_s19, %s4058_s19, %s4059_s20  }
  0x14   :  { %s4060_s23 = smov [#allocation7]   ;;  %s3939_s27 = scalar_lea.hbm %s4304_s3, 32768 }
  0x15   :  { %s55_s24 = sshll.u32 %s4060_s23, 4  ;;  %p3940_p8 = scmp.ne.s32.totalorder %s4304_s3, %s3939_s27  ;;  %s56_s24 = int_to_ptr.vmem [resolvable:$true] %s55_s24 }
  0x16   :  { %p3943_p9 = scmp.lt.u32.totalorder %s3939_s27, %s4304_s3 }
  0x18   :  { %p3945_p10 = pnand %p3943_p9, %p3940_p8 }
  0x1a   :  { %3948 = shalt.err (!%p3945_p10)
}
  0x1b   :  { %s3949_s12 = scalar_lea.vmem %s56_s24, 32768  ;;  %p3954_p12 = scmp.lt.s32.totalorder %s56_s24, %s56_s24 }
  0x1c   :  { %p3950_p11 = scmp.ne.s32.totalorder %s56_s24, %s3949_s12  ;;  %p3955_p13 = scmp.lt.s32.totalorder %s3949_s12, %s3949_s12 }
  0x1e   :  { %p3956_p0 = por %p3955_p13, %p3954_p12 }
  0x20   :  { %p3957_p1 = pnand %p3956_p0, %p3950_p11 }
  0x22   :  { %3960 = shalt.err (!%p3957_p1)
}
  0x23   :  { %s4061_s1 = smov 256   ;;  %s4062_s10 = smov 16  }
  0x24   :  { %61 = dma.hbm_to_vmem [thread:$0]  %s4304_s3, 32768, %s56_s24, [#allocation8], %s4061_s1, %s4061_s1, %s4062_s10  }
  0x25   :  { %s4063_s15 = smov [#allocation2]   ;;  %s4064_s17 = smov [#allocation6]  }
  0x26   :  { %s24_s16 = sshll.u32 %s4063_s15, 4  ;;  %s46_s18 = sshll.u32 %s4064_s17, 4  ;;  %s25_s16 = int_to_ptr.vmem [resolvable:$true] %s24_s16  ;;  %s47_s18 = int_to_ptr.vmem [resolvable:$true] %s46_s18 }
  0x27   :  { %s3961_s21 = scalar_lea.hbm %s4301_s0, 128 }
  0x28   :  { %p3962_p2 = scmp.ne.s32.totalorder %s4301_s0, %s3961_s21  ;;  %p3965_p3 = scmp.lt.u32.totalorder %s3961_s21, %s4301_s0 }
  0x2a   :  { %p3967_p4 = pnand %p3965_p3, %p3962_p2 }
  0x2c   :  { %3970 = shalt.err (!%p3967_p4)
}
  0x2d   :  { %s3971_s3 = scalar_lea.vmem %s25_s16, 128  ;;  %p3976_p6 = scmp.lt.s32.totalorder %s25_s16, %s25_s16 }
  0x2e   :  { %p3972_p5 = scmp.ne.s32.totalorder %s25_s16, %s3971_s3  ;;  %p3977_p7 = scmp.lt.s32.totalorder %s3971_s3, %s3971_s3 }
  0x30   :  { %p3978_p8 = por %p3977_p7, %p3976_p6 }
  0x32   :  { %p3979_p9 = pnand %p3978_p8, %p3972_p5 }
  0x34   :  { %3982 = shalt.err (!%p3979_p9)
}
  0x35   :  { %27 = dma.hbm_to_vmem [thread:$0]  %s4301_s0, 128, %s25_s16, [#allocation3]  }
  0x36   :  { %s3983_s30 = scalar_lea.hbm %s4303_s2, 128 }
  0x37   :  { %p3984_p10 = scmp.ne.s32.totalorder %s4303_s2, %s3983_s30  ;;  %p3987_p11 = scmp.lt.u32.totalorder %s3983_s30, %s4303_s2 }
  0x39   :  { %p3989_p12 = pnand %p3987_p11, %p3984_p10 }
  0x3b   :  { %3992 = shalt.err (!%p3989_p12)
}
  0x3c   :  { %s3993_s13 = scalar_lea.vmem %s47_s18, 128  ;;  %p3998_p0 = scmp.lt.s32.totalorder %s47_s18, %s47_s18 }
  0x3d   :  { %p3994_p13 = scmp.ne.s32.totalorder %s47_s18, %s3993_s13  ;;  %p3999_p1 = scmp.lt.s32.totalorder %s3993_s13, %s3993_s13 }
  0x3f   :  { %p4000_p2 = por %p3999_p1, %p3998_p0 }
  0x41   :  { %p4001_p3 = pnand %p4000_p2, %p3994_p13 }
  0x43   :  { %4004 = shalt.err (!%p4001_p3)
}
  0x44   :  { %49 = dma.hbm_to_vmem [thread:$0]  %s4303_s2, 128, %s47_s18, [#allocation5]  }
  0x45   :  { %s4065_s15 = smov [#allocation9]   ;;  %s4005_s20 = scalar_lea.hbm %s4306_s5, 8192 }
  0x46   :  { %s69_s16 = sshll.u32 %s4065_s15, 4  ;;  %p4006_p4 = scmp.ne.s32.totalorder %s4306_s5, %s4005_s20  ;;  %s70_s16 = int_to_ptr.vmem [resolvable:$true] %s69_s16 }
  0x47   :  { %p4009_p5 = scmp.lt.u32.totalorder %s4005_s20, %s4306_s5 }
  0x49   :  { %p4011_p6 = pnand %p4009_p5, %p4006_p4 }
  0x4b   :  { %4014 = shalt.err (!%p4011_p6)
}
  0x4c   :  { %s4015_s26 = scalar_lea.vmem %s70_s16, 8192  ;;  %p4020_p8 = scmp.lt.s32.totalorder %s70_s16, %s70_s16 }
  0x4d   :  { %p4016_p7 = scmp.ne.s32.totalorder %s70_s16, %s4015_s26  ;;  %p4021_p9 = scmp.lt.s32.totalorder %s4015_s26, %s4015_s26 }
  0x4f   :  { %p4022_p10 = por %p4021_p9, %p4020_p8 }
  0x51   :  { %p4023_p11 = pnand %p4022_p10, %p4016_p7 }
  0x53   :  { %4026 = shalt.err (!%p4023_p11)
}
  0x54   :  { %s4066_s2 = smov 128   ;;  %s4067_s18 = smov 8  }
  0x55   :  { %75 = dma.hbm_to_vmem [thread:$0]  %s4306_s5, 8192, %s70_s16, [#allocation8], %s4066_s2, %s4066_s2, %s4067_s18  }
  0x56   :  { %s4068_s27 = smov [#allocation10]   ;;  %s4027_s11 = scalar_lea.hbm %s4308_s7, 2048 }
  0x57   :  { %s83_s28 = sshll.u32 %s4068_s27, 4  ;;  %p4028_p12 = scmp.ne.s32.totalorder %s4308_s7, %s4027_s11  ;;  %s84_s28 = int_to_ptr.vmem [resolvable:$true] %s83_s28 }
  0x58   :  { %p4031_p13 = scmp.lt.u32.totalorder %s4027_s11, %s4308_s7 }
  0x5a   :  { %p4033_p0 = pnand %p4031_p13, %p4028_p12 }
  0x5c   :  { %4036 = shalt.err (!%p4033_p0)
}
  0x5d   :  { %s4037_s0 = scalar_lea.vmem %s84_s28, 2048  ;;  %p4042_p2 = scmp.lt.s32.totalorder %s84_s28, %s84_s28 }
  0x5e   :  { %p4038_p1 = scmp.ne.s32.totalorder %s84_s28, %s4037_s0  ;;  %p4043_p3 = scmp.lt.s32.totalorder %s4037_s0, %s4037_s0 }
  0x60   :  { %p4044_p4 = por %p4043_p3, %p4042_p2 }
  0x62   :  { %p4045_p5 = pnand %p4044_p4, %p4038_p1 }
  0x64   :  { %4048 = shalt.err (!%p4045_p5)
}
  0x65   :  { %s4069_s5 = smov 64   ;;  %s4070_s14 = smov 4  }
  0x66   :  { %89 = dma.hbm_to_vmem [thread:$0]  %s4308_s7, 2048, %s84_s28, [#allocation11], %s4069_s5, %s4069_s5, %s4070_s14  }
  0x67   :  { %4049 = dma.done.wait [#allocation3], 128  }
  0x68   :  { %4050 = vsyncadd [#allocation3], 4294967168 }
  0x69   :  { %4051 = dma.done.wait [#allocation5], 2176  }
  0x6a   :  { %4052 = vsyncadd [#allocation5], 4294965120 }
  0x6b   :  { %4053 = dma.done.wait [#allocation8], 40960  }
  0x6c   :  { %4054 = vsyncadd [#allocation8], 4294926336 }
  0x6d   :  { %4055 = dma.done.wait [#allocation11], 2048  }
  0x6e   :  { %4056 = vsyncadd [#allocation11], 4294965248  ;;  %v4071_v0 = vmov 0   ;;  %v113_v1 = vld [vmem:[#allocation4] sm:$0xff]  ;;  %v114_v8 = vld [vmem:[#allocation4 + $0x8] sm:$0xff]  ;;  %vm251_vm0 = vcmask 261120  }
  0x6f   :  { %287 = vmatprep.mubr.bf16.mxu0 %v4071_v0  ;;  %v117_v2 = vld [vmem:[#allocation4 + $0x20] sm:$0xff]  ;;  %v118_v9 = vld [vmem:[#allocation4 + $0x28] sm:$0xff]  ;;  %v111_v11 = vld [vmem:[#allocation2] sm:$0xff] }
  0x70   :  { %v121_v3 = vld [vmem:[#allocation4 + $0x40] sm:$0xff]  ;;  %v2996_v4 = vcombine.high %v113_v1, %v117_v2  ;;  %v2995_v5 = vcombine.low %v113_v1, %v117_v2  ;;  %v2998_v12 = vcombine.high %v114_v8, %v118_v9  ;;  %v122_v13 = vld [vmem:[#allocation4 + $0x48] sm:$0xff]  ;;  %v4195_v17 = vpack.c.bf16 %v111_v11, %v111_v11  ;;  %v115_v22 = vld [vmem:[#allocation4 + $0x10] sm:$0xff] }
  0x71   :  { %v125_v6 = vld [vmem:[#allocation4 + $0x60] sm:$0xff]  ;;  %v126_v14 = vld [vmem:[#allocation4 + $0x68] sm:$0xff]  ;;  %v2997_v19 = vcombine.low %v114_v8, %v118_v9  ;;  %v119_v23 = vld [vmem:[#allocation4 + $0x30] sm:$0xff] }
  0x72   :  { %v3004_v7 = vcombine.high %v121_v3, %v125_v6  ;;  %255 = vmatprep.subr.bf16.mxu0 %v2996_v4  ;;  %v3003_v10 = vcombine.low %v121_v3, %v125_v6  ;;  %v3421_v15 = vld [vmem:[#allocation7 + $0x4] ss:$16 sps:$4 sm:$0xff]   ;;  %v3423_v16 = vld [vmem:[#allocation7] ss:$16 sps:$4 sm:$0xff]   ;;  %v3006_v20 = vcombine.high %v122_v13, %v126_v14  ;;  %v3005_v25 = vcombine.low %v122_v13, %v126_v14  ;;  %v123_v26 = vld [vmem:[#allocation4 + $0x50] sm:$0xff] }
  0x73   :  { %256 = vmatpush1.bf16.msra.mxu0 %v2995_v5  ;;  %v3424_v18 = vld [vmem:[#allocation7 + $0x24] ss:$16 sps:$4 sm:$0xff]   ;;  %1993 = vmatprep.subr.bf16.mxu1 %v3421_v15  ;;  %v3426_v21 = vld [vmem:[#allocation7 + $0x20] ss:$16 sps:$4 sm:$0xff]   ;;  %v3000_v27 = vcombine.high %v115_v22, %v119_v23  ;;  %v127_v28 = vld [vmem:[#allocation4 + $0x70] sm:$0xff]  ;;  %v2999_v31 = vcombine.low %v115_v22, %v119_v23 }
  0x74   :  { %257 = vmatprep.subr.bf16.mxu0 %v3004_v7  ;;  %1994 = vmatpush1.bf16.msra.mxu1 %v3423_v16  ;;  %v3427_v24 = vld [vmem:[#allocation7 + $0x44] ss:$16 sps:$4 sm:$0xff]   ;;  %v3432_v29 = vld [vmem:[#allocation7 + $0x40] ss:$16 sps:$4 sm:$0xff]   ;;  %v3008_v32 = vcombine.high %v123_v26, %v127_v28  ;;  %v3007_v37 = vcombine.low %v123_v26, %v127_v28 }
  0x75   :  { %1995 = vmatprep.subr.bf16.mxu1 %v3424_v18  ;;  %v3433_v30 = vld [vmem:[#allocation7 + $0x64] ss:$16 sps:$4 sm:$0xff]   ;;  %v3438_v33 = vld [vmem:[#allocation7 + $0x60] ss:$16 sps:$4 sm:$0xff]  }
  0x76   :  { %v116_v34 = vld [vmem:[#allocation4 + $0x18] sm:$0xff] }
  0x77   :  { %258 = vmatpush1.bf16.msra.mxu0 %v3003_v10  ;;  %v120_v35 = vld [vmem:[#allocation4 + $0x38] sm:$0xff] }
  0x78   :  { %296 = vmatprep.subr.bf16.mxu0 %v2998_v12  ;;  %1996 = vmatpush1.bf16.msra.mxu1 %v3426_v21  ;;  %v3439_v36 = vld [vmem:[#allocation7 + $0x84] ss:$16 sps:$4 sm:$0xff]   ;;  %v3002_v39 = vcombine.high %v116_v34, %v120_v35  ;;  %v3444_v41 = vld [vmem:[#allocation7 + $0x80] ss:$16 sps:$4 sm:$0xff]   ;;  %v3001_v43 = vcombine.low %v116_v34, %v120_v35 }
  0x79   :  { %1997 = vmatprep.subr.bf16.mxu1 %v3427_v24  ;;  %v124_v38 = vld [vmem:[#allocation4 + $0x58] sm:$0xff] }
  0x7a   :  { %3011 = vmatmul.mubr.msk.bf16.vlgmr.msra.gmra.mrb[0].mxu0 %vm251_vm0, %v4195_v17  ;;  %v128_v40 = vld [vmem:[#allocation4 + $0x78] sm:$0xff] }
  0x7b   :  { %297 = vmatpush1.bf16.msra.mxu0 %v2997_v19  ;;  %328 = vmatprep.mubr.bf16.mxu0 %v4071_v0  ;;  %v3445_v42 = vld [vmem:[#allocation7 + $0xa4] ss:$16 sps:$4 sm:$0xff]   ;;  %v3010_v44 = vcombine.high %v124_v38, %v128_v40  ;;  %v3450_v45 = vld [vmem:[#allocation7 + $0xa0] ss:$16 sps:$4 sm:$0xff]   ;;  %v3009_v47 = vcombine.low %v124_v38, %v128_v40  ;;  %v4213_v40 = vld [vmem:[#allocation6] sm:$0xff] }
  0x7c   :  { %298 = vmatprep.subr.bf16.mxu0 %v3006_v20  ;;  %1998 = vmatpush1.bf16.msra.mxu1 %v3432_v29  ;;  %v3451_v46 = vld [vmem:[#allocation7 + $0xc4] ss:$16 sps:$4 sm:$0xff]   ;;  %v3456_v49 = vld [vmem:[#allocation7 + $0xc0] ss:$16 sps:$4 sm:$0xff]  }
  0x7d   :  { %1999 = vmatprep.subr.bf16.mxu1 %v3433_v30  ;;  %v3431_v48 = vld [vmem:[#allocation7 + $0x204] ss:$16 sps:$4 sm:$0xff]   ;;  %v3429_v51 = vld [vmem:[#allocation7 + $0x200] ss:$16 sps:$4 sm:$0xff]  }
  0x7e   :  { %v3457_v50 = vld [vmem:[#allocation7 + $0xe4] ss:$16 sps:$4 sm:$0xff]   ;;  %v3462_v53 = vld [vmem:[#allocation7 + $0xe0] ss:$16 sps:$4 sm:$0xff]  }
  0x7f   :  { %299 = vmatpush1.bf16.msra.mxu0 %v3005_v25  ;;  %v3437_v52 = vld [vmem:[#allocation7 + $0x224] ss:$16 sps:$4 sm:$0xff]   ;;  %v3435_v55 = vld [vmem:[#allocation7 + $0x220] ss:$16 sps:$4 sm:$0xff]  }
  0x80   :  { %337 = vmatprep.subr.bf16.mxu0 %v3000_v27  ;;  %2000 = vmatpush1.bf16.msra.mxu1 %v3438_v33  ;;  %v3463_v54 = vld [vmem:[#allocation7 + $0x104] ss:$16 sps:$4 sm:$0xff]   ;;  %v3468_v57 = vld [vmem:[#allocation7 + $0x100] ss:$16 sps:$4 sm:$0xff]  }
  0x81   :  { %2001 = vmatprep.subr.bf16.mxu1 %v3439_v36  ;;  %v3443_v56 = vld [vmem:[#allocation7 + $0x244] ss:$16 sps:$4 sm:$0xff]   ;;  %v3441_v59 = vld [vmem:[#allocation7 + $0x240] ss:$16 sps:$4 sm:$0xff]  }
  0x82   :  { %3012 = vmatmul.mubr.msk.bf16.vlgmr.msra.gmra.mrb[4].mxu0 %vm251_vm0, %v4195_v17  ;;  %v3469_v58 = vld [vmem:[#allocation7 + $0x124] ss:$16 sps:$4 sm:$0xff]   ;;  %v3474_v61 = vld [vmem:[#allocation7 + $0x120] ss:$16 sps:$4 sm:$0xff]  }
  0x83   :  { %338 = vmatpush1.bf16.msra.mxu0 %v2999_v31  ;;  %369 = vmatprep.mubr.bf16.mxu0 %v4071_v0  ;;  %v3449_v60 = vld [vmem:[#allocation7 + $0x264] ss:$16 sps:$4 sm:$0xff]   ;;  %v3447_v63 = vld [vmem:[#allocation7 + $0x260] ss:$16 sps:$4 sm:$0xff]  }
  0x84   :  { %339 = vmatprep.subr.bf16.mxu0 %v3008_v32  ;;  %2002 = vmatpush1.bf16.msra.mxu1 %v3444_v41  ;;  %v3475_v62 = vld [vmem:[#allocation7 + $0x144] ss:$16 sps:$4 sm:$0xff]   ;;  %v3480_v1 = vld [vmem:[#allocation7 + $0x140] ss:$16 sps:$4 sm:$0xff]   ;;  %v3516_v32 = vld [vmem:[#allocation7 + $0xc] ss:$16 sps:$4 sm:$0xff]  }
  0x85   :  { %2003 = vmatprep.subr.bf16.mxu1 %v3445_v42  ;;  %v3481_v2 = vld [vmem:[#allocation7 + $0x164] ss:$16 sps:$4 sm:$0xff]   ;;  %v3453_v3 = vld [vmem:[#allocation7 + $0x280] ss:$16 sps:$4 sm:$0xff]  }
  0x86   :  { %v3461_v4 = vld [vmem:[#allocation7 + $0x2a4] ss:$16 sps:$4 sm:$0xff]   ;;  %v3486_v5 = vld [vmem:[#allocation7 + $0x160] ss:$16 sps:$4 sm:$0xff]  }
  0x87   :  { %340 = vmatpush1.bf16.msra.mxu0 %v3007_v37  ;;  %v3487_v6 = vld [vmem:[#allocation7 + $0x184] ss:$16 sps:$4 sm:$0xff]   ;;  %v3459_v7 = vld [vmem:[#allocation7 + $0x2a0] ss:$16 sps:$4 sm:$0xff]   ;;  %v131_v37 = vlaneseq }
  0x88   :  { %378 = vmatprep.subr.bf16.mxu0 %v3002_v39  ;;  %2004 = vmatpush1.bf16.msra.mxu1 %v3450_v45  ;;  %v3467_v8 = vld [vmem:[#allocation7 + $0x2c4] ss:$16 sps:$4 sm:$0xff]   ;;  %v3492_v9 = vld [vmem:[#allocation7 + $0x180] ss:$16 sps:$4 sm:$0xff]  }
  0x89   :  { %2005 = vmatprep.subr.bf16.mxu1 %v3451_v46  ;;  %v3493_v10 = vld [vmem:[#allocation7 + $0x1a4] ss:$16 sps:$4 sm:$0xff]   ;;  %v3465_v11 = vld [vmem:[#allocation7 + $0x2c0] ss:$16 sps:$4 sm:$0xff]   ;;  %v4208_v38 = vshrl.u32 %v131_v37, 7 }
  0x8a   :  { %3013 = vmatmul.mubr.msk.bf16.vlgmr.msra.gmra.mrb[8].mxu0 %vm251_vm0, %v4195_v17  ;;  %v3473_v12 = vld [vmem:[#allocation7 + $0x2e4] ss:$16 sps:$4 sm:$0xff]   ;;  %v3498_v13 = vld [vmem:[#allocation7 + $0x1a0] ss:$16 sps:$4 sm:$0xff]  }
  0x8b   :  { %379 = vmatpush1.bf16.msra.mxu0 %v3001_v43  ;;  %410 = vmatprep.mubr.bf16.mxu0 %v4071_v0  ;;  %v3455_v0 = vld [vmem:[#allocation7 + $0x284] ss:$16 sps:$4 sm:$0xff]   ;;  %v3471_v14 = vld [vmem:[#allocation7 + $0x2e0] ss:$16 sps:$4 sm:$0xff]   ;;  %v4211_v39 = vsub.s32 0, %v4208_v38  ;;  %v4216_v41 = vsub.s32 1, %v4208_v38 }
  0x8c   :  { %380 = vmatprep.subr.bf16.mxu0 %v3010_v44  ;;  %2006 = vmatpush1.bf16.msra.mxu1 %v3456_v49  ;;  %v3479_v15 = vld [vmem:[#allocation7 + $0x304] ss:$16 sps:$4 sm:$0xff]   ;;  %v3477_v16 = vld [vmem:[#allocation7 + $0x300] ss:$16 sps:$4 sm:$0xff]  }
  0x8d   :  { %2007 = vmatprep.subr.bf16.mxu1 %v3457_v50  ;;  %v3483_v18 = vld [vmem:[#allocation7 + $0x320] ss:$16 sps:$4 sm:$0xff]   ;;  %v3491_v19 = vld [vmem:[#allocation7 + $0x344] ss:$16 sps:$4 sm:$0xff]   ;;  %v134_v42 = vrot.slane %v4213_v40, %v4211_v39  ;;  %v138_v43 = vrot.slane %v4213_v40, %v4216_v41  ;;  %v145_v50 = vsub.s32 3, %v4208_v38 }
  0x8e   :  { %v3489_v20 = vld [vmem:[#allocation7 + $0x340] ss:$16 sps:$4 sm:$0xff]   ;;  %v3497_v21 = vld [vmem:[#allocation7 + $0x364] ss:$16 sps:$4 sm:$0xff]  }
  0x8f   :  { %381 = vmatpush1.bf16.msra.mxu0 %v3009_v47  ;;  %v3495_v22 = vld [vmem:[#allocation7 + $0x360] ss:$16 sps:$4 sm:$0xff]   ;;  %v3499_v23 = vld [vmem:[#allocation7 + $0x1c4] ss:$16 sps:$4 sm:$0xff]   ;;  %v141_v47 = vsub.s32 2, %v4208_v38 }
  0x90   :  { %2034 = vmatprep.subr.bf16.mxu0 %v3431_v48  ;;  %2008 = vmatpush1.bf16.msra.mxu1 %v3462_v53  ;;  %v3503_v24 = vld [vmem:[#allocation7 + $0x384] ss:$16 sps:$4 sm:$0xff]   ;;  %v3501_v25 = vld [vmem:[#allocation7 + $0x380] ss:$16 sps:$4 sm:$0xff]  }
  0x91   :  { %2009 = vmatprep.subr.bf16.mxu1 %v3463_v54  ;;  %v3504_v26 = vld [vmem:[#allocation7 + $0x1c0] ss:$16 sps:$4 sm:$0xff]   ;;  %v3505_v27 = vld [vmem:[#allocation7 + $0x1e4] ss:$16 sps:$4 sm:$0xff]   ;;  %v142_v54 = vrot.slane %v4213_v40, %v141_v47 }
  0x92   :  { %3014 = vmatmul.mubr.msk.bf16.vlgmr.msra.gmra.mrb[12].mxu0 %vm251_vm0, %v4195_v17  ;;  %v3485_v17 = vld [vmem:[#allocation7 + $0x324] ss:$16 sps:$4 sm:$0xff]   ;;  %v3507_v29 = vld [vmem:[#allocation7 + $0x3a0] ss:$16 sps:$4 sm:$0xff]  }
  0x93   :  { %2035 = vmatpush1.bf16.msra.mxu0 %v3429_v51  ;;  %v3509_v28 = vld [vmem:[#allocation7 + $0x3a4] ss:$16 sps:$4 sm:$0xff]   ;;  %v3510_v30 = vld [vmem:[#allocation7 + $0x1e0] ss:$16 sps:$4 sm:$0xff]  }
  0x94   :  { %2036 = vmatprep.subr.bf16.mxu0 %v3437_v52  ;;  %2010 = vmatpush1.bf16.msra.mxu1 %v3468_v57  ;;  %v3513_v31 = vld [vmem:[#allocation7 + $0x3c4] ss:$16 sps:$4 sm:$0xff]   ;;  %v3511_v33 = vld [vmem:[#allocation7 + $0x3c0] ss:$16 sps:$4 sm:$0xff]   ;;  %v146_v57 = vrot.slane %v4213_v40, %v145_v50 }
  0x95   :  { %2011 = vmatprep.subr.bf16.mxu1 %v3469_v58  ;;  %v3519_v34 = vld [vmem:[#allocation7 + $0x3e4] ss:$16 sps:$4 sm:$0xff]   ;;  %v3517_v35 = vld [vmem:[#allocation7 + $0x3e0] ss:$16 sps:$4 sm:$0xff]  }
  0x96   :  { %v3525_v36 = vld [vmem:[#allocation7 + $0x404] ss:$16 sps:$4 sm:$0xff]   ;;  %v3547_v37 = vld [vmem:[#allocation7 + $0x480] ss:$16 sps:$4 sm:$0xff]  }
  0x97   :  { %2037 = vmatpush1.bf16.msra.mxu0 %v3435_v55 }
  0x98   :  { %2038 = vmatprep.subr.bf16.mxu0 %v3443_v56  ;;  %2012 = vmatpush1.bf16.msra.mxu1 %v3474_v61  ;;  %v3514_v56 = vld [vmem:[#allocation7 + $0x8] ss:$16 sps:$4 sm:$0xff]  }
  0x99   :  { %2013 = vmatprep.subr.bf16.mxu1 %v3475_v62 }
  0x9b   :  { %2039 = vmatpush1.bf16.msra.mxu0 %v3441_v59  ;;  %v3522_v59 = vld [vmem:[#allocation7 + $0x2c] ss:$16 sps:$4 sm:$0xff]  }
  0x9c   :  { %2040 = vmatprep.subr.bf16.mxu0 %v3449_v60  ;;  %2014 = vmatpush1.bf16.msra.mxu1 %v3480_v1 }
  0x9d   :  { %2015 = vmatprep.subr.bf16.mxu1 %v3481_v2  ;;  %v153_v2 = vsub.s32 5, %v4208_v38 }
  0x9f   :  { %2041 = vmatpush1.bf16.msra.mxu0 %v3447_v63 }
  0xa0   :  { %2042 = vmatprep.subr.bf16.mxu0 %v3455_v0  ;;  %2016 = vmatpush1.bf16.msra.mxu1 %v3486_v5  ;;  %v3520_v0 = vld [vmem:[#allocation7 + $0x28] ss:$16 sps:$4 sm:$0xff]  }
  0xa1   :  { %2017 = vmatprep.subr.bf16.mxu1 %v3487_v6 }
  0xa3   :  { %2043 = vmatpush1.bf16.msra.mxu0 %v3453_v3 }
  0xa4   :  { %2044 = vmatprep.subr.bf16.mxu0 %v3461_v4  ;;  %2018 = vmatpush1.bf16.msra.mxu1 %v3492_v9  ;;  %v3528_v4 = vld [vmem:[#allocation7 + $0x4c] ss:$16 sps:$4 sm:$0xff]   ;;  %v3523_v9 = vld [vmem:[#allocation7 + $0x400] ss:$16 sps:$4 sm:$0xff]  }
  0xa5   :  { %2019 = vmatprep.subr.bf16.mxu1 %v3493_v10  ;;  %v3526_v10 = vld [vmem:[#allocation7 + $0x48] ss:$16 sps:$4 sm:$0xff]  }
  0xa7   :  { %2045 = vmatpush1.bf16.msra.mxu0 %v3459_v7 }
  0xa8   :  { %2046 = vmatprep.subr.bf16.mxu0 %v3467_v8  ;;  %2020 = vmatpush1.bf16.msra.mxu1 %v3498_v13  ;;  %v3534_v13 = vld [vmem:[#allocation7 + $0x6c] ss:$16 sps:$4 sm:$0xff]  }
  0xa9   :  { %2021 = vmatprep.subr.bf16.mxu1 %v3499_v23 }
  0xab   :  { %2047 = vmatpush1.bf16.msra.mxu0 %v3465_v11  ;;  %v154_v11 = vrot.slane %v4213_v40, %v153_v2  ;;  %v3585_v2 = vld [vmem:[#allocation7 + $0x544] ss:$16 sps:$4 sm:$0xff]  }
  0xac   :  { %2048 = vmatprep.subr.bf16.mxu0 %v3473_v12  ;;  %2022 = vmatpush1.bf16.msra.mxu1 %v3504_v26  ;;  %v3531_v12 = vld [vmem:[#allocation7 + $0x424] ss:$16 sps:$4 sm:$0xff]  }
  0xad   :  { %2023 = vmatprep.subr.bf16.mxu1 %v3505_v27  ;;  %v3543_v27 = vld [vmem:[#allocation7 + $0x464] ss:$16 sps:$4 sm:$0xff]  }
  0xaf   :  { %2049 = vmatpush1.bf16.msra.mxu0 %v3471_v14 }
  0xb0   :  { %2050 = vmatprep.subr.bf16.mxu0 %v3479_v15  ;;  %2024 = vmatpush1.bf16.msra.mxu1 %v3510_v30 }
  0xb1   :  { %2157 = vmatprep.subr.bf16.mxu1 %v3516_v32  ;;  %v3544_v32 = vld [vmem:[#allocation7 + $0xa8] ss:$16 sps:$4 sm:$0xff]  }
  0xb3   :  { %2051 = vmatpush1.bf16.msra.mxu0 %v3477_v16  ;;  %v3529_v16 = vld [vmem:[#allocation7 + $0x420] ss:$16 sps:$4 sm:$0xff]  }
  0xb4   :  { %2052 = vmatprep.subr.bf16.mxu0 %v3485_v17  ;;  %v3532_v17 = vld [vmem:[#allocation7 + $0x68] ss:$16 sps:$4 sm:$0xff]  }
  0xb7   :  { %2053 = vmatpush1.bf16.msra.mxu0 %v3483_v18 }
  0xb8   :  { %2054 = vmatprep.subr.bf16.mxu0 %v3491_v19 }
  0xbb   :  { %2055 = vmatpush1.bf16.msra.mxu0 %v3489_v20  ;;  %v3537_v20 = vld [vmem:[#allocation7 + $0x444] ss:$16 sps:$4 sm:$0xff]  }
  0xbc   :  { %2056 = vmatprep.subr.bf16.mxu0 %v3497_v21  ;;  %v3540_v21 = vld [vmem:[#allocation7 + $0x8c] ss:$16 sps:$4 sm:$0xff]  }
  0xbf   :  { %2057 = vmatpush1.bf16.msra.mxu0 %v3495_v22 }
  0xc0   :  { %2058 = vmatprep.subr.bf16.mxu0 %v3503_v24  ;;  %v3535_v24 = vld [vmem:[#allocation7 + $0x440] ss:$16 sps:$4 sm:$0xff]  }
  0xc3   :  { %2059 = vmatpush1.bf16.msra.mxu0 %v3501_v25  ;;  %v3538_v25 = vld [vmem:[#allocation7 + $0x88] ss:$16 sps:$4 sm:$0xff]  }
  0xc4   :  { %2060 = vmatprep.subr.bf16.mxu0 %v3509_v28  ;;  %v3546_v28 = vld [vmem:[#allocation7 + $0xac] ss:$16 sps:$4 sm:$0xff]  }
  0xc7   :  { %2061 = vmatpush1.bf16.msra.mxu0 %v3507_v29 }
  0xc8   :  { %2062 = vmatprep.subr.bf16.mxu0 %v3513_v31  ;;  %v3541_v31 = vld [vmem:[#allocation7 + $0x460] ss:$16 sps:$4 sm:$0xff]  }
  0xcb   :  { %2063 = vmatpush1.bf16.msra.mxu0 %v3511_v33 }
  0xcc   :  { %2064 = vmatprep.subr.bf16.mxu0 %v3519_v34  ;;  %v3549_v34 = vld [vmem:[#allocation7 + $0x484] ss:$16 sps:$4 sm:$0xff]  }
  0xcf   :  { %2065 = vmatpush1.bf16.msra.mxu0 %v3517_v35  ;;  %v3552_v35 = vld [vmem:[#allocation7 + $0xcc] ss:$16 sps:$4 sm:$0xff]  }
  0xd0   :  { %2075 = vmatprep.subr.bf16.mxu0 %v3525_v36 }
 0x14d   :  { %v289_v44 = vpop.f32.mrb[0].mxu0 }
 0x14e   :  { %v290_v45 = vadd.f32 %v289_v44, %v134_v42  ;;  %v291_v46 = vpop.f32.mrb[1].mxu0  ;;  %v3550_v42 = vld [vmem:[#allocation7 + $0xc8] ss:$16 sps:$4 sm:$0xff]   ;;  %v3558_v44 = vld [vmem:[#allocation7 + $0xec] ss:$16 sps:$4 sm:$0xff]  }
 0x14f   :  { %v292_v48 = vadd.f32 %v291_v46, %v138_v43  ;;  %v293_v49 = vpop.f32.mrb[2].mxu0  ;;  %v3555_v43 = vld [vmem:[#allocation7 + $0x4a4] ss:$16 sps:$4 sm:$0xff]   ;;  %v3556_v46 = vld [vmem:[#allocation7 + $0xe8] ss:$16 sps:$4 sm:$0xff]  }
 0x150   :  { %v419_v51 = vmax.f32 %v290_v45, 0.0  ;;  %v294_v52 = vpop.f32.mrb[3].mxu0  ;;  %v3553_v45 = vld [vmem:[#allocation7 + $0x4a0] ss:$16 sps:$4 sm:$0xff]   ;;  %v3564_v49 = vld [vmem:[#allocation7 + $0x10c] ss:$16 sps:$4 sm:$0xff]  }
 0x151   :  { %v420_v53 = vmax.f32 %v292_v48, 0.0  ;;  %v3561_v48 = vld [vmem:[#allocation7 + $0x4c4] ss:$16 sps:$4 sm:$0xff]   ;;  %v3562_v52 = vld [vmem:[#allocation7 + $0x108] ss:$16 sps:$4 sm:$0xff]  }
 0x152   :  { %v4230_v58 = vpack.c.bf16 %v419_v51, %v419_v51  ;;  %v3559_v51 = vld [vmem:[#allocation7 + $0x4c0] ss:$16 sps:$4 sm:$0xff]  }
 0x153   :  { %v428_v55 = vpack.c.bf16 %v420_v53, %v420_v53  ;;  %v3567_v53 = vld [vmem:[#allocation7 + $0x4e4] ss:$16 sps:$4 sm:$0xff]  }
 0x155   :  { %v330_v60 = vpop.f32.mrb[4].mxu0  ;;  %2025 = vmatprep.mubr.bf16.mxu1 %v428_v55 }
 0x156   :  { %v331_v61 = vadd.f32 %v330_v60, %v142_v54  ;;  %v332_v62 = vpop.f32.mrb[5].mxu0  ;;  %2026 = vmatmul.mubr.bf16.vlgmr.msra.gmra.mrb[0].mxu1 %v4230_v58  ;;  %v3570_v54 = vld [vmem:[#allocation7 + $0x12c] ss:$16 sps:$4 sm:$0xff]   ;;  %v3571_v60 = vld [vmem:[#allocation7 + $0x500] ss:$16 sps:$4 sm:$0xff]  }
 0x157   :  { %v333_v63 = vadd.f32 %v332_v62, %v146_v57  ;;  %2158 = vmatpush1.bf16.msra.mxu1 %v3514_v56  ;;  %2189 = vmatprep.mubr.bf16.mxu1 %v428_v55  ;;  %v334_v1 = vpop.f32.mrb[6].mxu0  ;;  %v3565_v55 = vld [vmem:[#allocation7 + $0x4e0] ss:$16 sps:$4 sm:$0xff]   ;;  %v3568_v56 = vld [vmem:[#allocation7 + $0x128] ss:$16 sps:$4 sm:$0xff]  }
 0x158   :  { %v421_v3 = vmax.f32 %v331_v61, 0.0  ;;  %2159 = vmatprep.subr.bf16.mxu1 %v3522_v59  ;;  %v335_v5 = vpop.f32.mrb[7].mxu0  ;;  %v3573_v57 = vld [vmem:[#allocation7 + $0x504] ss:$16 sps:$4 sm:$0xff]   ;;  %v3576_v59 = vld [vmem:[#allocation7 + $0x14c] ss:$16 sps:$4 sm:$0xff]  }
 0x159   :  { %v422_v6 = vmax.f32 %v333_v63, 0.0  ;;  %v3574_v61 = vld [vmem:[#allocation7 + $0x148] ss:$16 sps:$4 sm:$0xff]   ;;  %v3579_v62 = vld [vmem:[#allocation7 + $0x524] ss:$16 sps:$4 sm:$0xff]  }
 0x15a   :  { %v4234_v7 = vpack.c.bf16 %v421_v3, %v421_v3  ;;  %v3582_v63 = vld [vmem:[#allocation7 + $0x16c] ss:$16 sps:$4 sm:$0xff]   ;;  %v3580_v1 = vld [vmem:[#allocation7 + $0x168] ss:$16 sps:$4 sm:$0xff]  }
 0x15b   :  { %v4236_v8 = vpack.c.bf16 %v422_v6, %v422_v6  ;;  %2160 = vmatpush1.bf16.msra.mxu1 %v3520_v0  ;;  %v3577_v0 = vld [vmem:[#allocation7 + $0x520] ss:$16 sps:$4 sm:$0xff]   ;;  %v3588_v3 = vld [vmem:[#allocation7 + $0x18c] ss:$16 sps:$4 sm:$0xff]   ;;  %v3586_v5 = vld [vmem:[#allocation7 + $0x188] ss:$16 sps:$4 sm:$0xff]  }
 0x15c   :  { %2161 = vmatprep.subr.bf16.mxu1 %v3528_v4  ;;  %v3583_v4 = vld [vmem:[#allocation7 + $0x540] ss:$16 sps:$4 sm:$0xff]   ;;  %v3591_v6 = vld [vmem:[#allocation7 + $0x564] ss:$16 sps:$4 sm:$0xff]  }
 0x15d   :  { %2066 = vmatprep.mubr.bf16.mxu0 %v4236_v8  ;;  %v4240_v14 = vpop.f32.mrb[8].mxu0 }
 0x15e   :  { %2067 = vmatmul.mubr.bf16.vlgmr.msra.gmra.mrb[16].mxu0 %v4234_v7  ;;  %v373_v15 = vpop.f32.mrb[9].mxu0 }
 0x15f   :  { %2076 = vmatpush1.bf16.msra.mxu0 %v3523_v9  ;;  %2162 = vmatpush1.bf16.msra.mxu1 %v3526_v10  ;;  %v374_v18 = vadd.f32 %v373_v15, %v154_v11  ;;  %v375_v19 = vpop.f32.mrb[10].mxu0  ;;  %v3594_v9 = vld [vmem:[#allocation7 + $0x1ac] ss:$16 sps:$4 sm:$0xff]   ;;  %v3589_v10 = vld [vmem:[#allocation7 + $0x560] ss:$16 sps:$4 sm:$0xff]   ;;  %v149_v15 = vsub.s32 4, %v4208_v38 }
 0x160   :  { %2077 = vmatprep.subr.bf16.mxu0 %v3531_v12  ;;  %2163 = vmatprep.subr.bf16.mxu1 %v3534_v13  ;;  %v376_v22 = vpop.f32.mrb[11].mxu0  ;;  %v3592_v11 = vld [vmem:[#allocation7 + $0x1a8] ss:$16 sps:$4 sm:$0xff]   ;;  %v3597_v12 = vld [vmem:[#allocation7 + $0x584] ss:$16 sps:$4 sm:$0xff]  }
 0x161   :  { %v424_v23 = vmax.f32 %v374_v18, 0.0  ;;  %v3600_v13 = vld [vmem:[#allocation7 + $0x1cc] ss:$16 sps:$4 sm:$0xff]   ;;  %v3603_v18 = vld [vmem:[#allocation7 + $0x5a4] ss:$16 sps:$4 sm:$0xff]  }
 0x162   :  { %v3606_v19 = vld [vmem:[#allocation7 + $0x1ec] ss:$16 sps:$4 sm:$0xff]   ;;  %v3601_v22 = vld [vmem:[#allocation7 + $0x5a0] ss:$16 sps:$4 sm:$0xff]  }
 0x163   :  { %2078 = vmatpush1.bf16.msra.mxu0 %v3529_v16  ;;  %2164 = vmatpush1.bf16.msra.mxu1 %v3532_v17  ;;  %v4243_v26 = vpack.c.bf16 %v424_v23, %v424_v23  ;;  %v3595_v16 = vld [vmem:[#allocation7 + $0x580] ss:$16 sps:$4 sm:$0xff]   ;;  %v3598_v17 = vld [vmem:[#allocation7 + $0x1c8] ss:$16 sps:$4 sm:$0xff]  }
 0x164   :  { %2079 = vmatprep.subr.bf16.mxu0 %v3537_v20  ;;  %2165 = vmatprep.subr.bf16.mxu1 %v3540_v21  ;;  %v161_v20 = vsub.s32 7, %v4208_v38  ;;  %v150_v21 = vrot.slane %v4213_v40, %v149_v15  ;;  %v3604_v23 = vld [vmem:[#allocation7 + $0x1e8] ss:$16 sps:$4 sm:$0xff]  }
 0x165   :  { %2107 = vmatprep.mubr.bf16.mxu0 %v4243_v26  ;;  %v4246_v29 = vpop.f32.mrb[12].mxu0  ;;  %v3664_v15 = vld [vmem:[#allocation7 + $0x328] ss:$16 sps:$4 sm:$0xff]  }
 0x166   :  { %v4248_v30 = vpop.f32.mrb[13].mxu0 }
 0x167   :  { %2080 = vmatpush1.bf16.msra.mxu0 %v3535_v24  ;;  %2166 = vmatpush1.bf16.msra.mxu1 %v3538_v25  ;;  %v416_v33 = vpop.f32.mrb[14].mxu0  ;;  %v3609_v24 = vld [vmem:[#allocation7 + $0x5c4] ss:$16 sps:$4 sm:$0xff]   ;;  %v3612_v25 = vld [vmem:[#allocation7 + $0x20c] ss:$16 sps:$4 sm:$0xff]  }
 0x168   :  { %2081 = vmatprep.subr.bf16.mxu0 %v3543_v27  ;;  %2167 = vmatprep.subr.bf16.mxu1 %v3546_v28  ;;  %v417_v36 = vpop.f32.mrb[15].mxu0  ;;  %v162_v27 = vrot.slane %v4213_v40, %v161_v20  ;;  %v372_v28 = vadd.f32 %v4240_v14, %v150_v21  ;;  %v3615_v33 = vld [vmem:[#allocation7 + $0x5e4] ss:$16 sps:$4 sm:$0xff]   ;;  %v3678_v21 = vld [vmem:[#allocation7 + $0x36c] ss:$16 sps:$4 sm:$0xff]  }
 0x169   :  { %v3621_v14 = vld [vmem:[#allocation7 + $0x604] ss:$16 sps:$4 sm:$0xff]  }
 0x16a   :  { %v423_v36 = vmax.f32 %v372_v28, 0.0  ;;  %v3675_v20 = vld [vmem:[#allocation7 + $0x724] ss:$16 sps:$4 sm:$0xff]   ;;  %v3682_v28 = vld [vmem:[#allocation7 + $0x388] ss:$16 sps:$4 sm:$0xff]  }
 0x16b   :  { %2082 = vmatpush1.bf16.msra.mxu0 %v3541_v31  ;;  %2168 = vmatpush1.bf16.msra.mxu1 %v3544_v32  ;;  %v3607_v31 = vld [vmem:[#allocation7 + $0x5c0] ss:$16 sps:$4 sm:$0xff]   ;;  %v3610_v32 = vld [vmem:[#allocation7 + $0x208] ss:$16 sps:$4 sm:$0xff]  }
 0x16c   :  { %2083 = vmatprep.subr.bf16.mxu0 %v3549_v34  ;;  %2169 = vmatprep.subr.bf16.mxu1 %v3552_v35  ;;  %v3618_v34 = vld [vmem:[#allocation7 + $0x22c] ss:$16 sps:$4 sm:$0xff]   ;;  %v415_v35 = vadd.f32 %v4248_v30, %v162_v27  ;;  %v3622_v30 = vld [vmem:[#allocation7 + $0x248] ss:$16 sps:$4 sm:$0xff]   ;;  %v3679_v27 = vld [vmem:[#allocation7 + $0x740] ss:$16 sps:$4 sm:$0xff]  }
 0x16f   :  { %2084 = vmatpush1.bf16.msra.mxu0 %v3547_v37  ;;  %2170 = vmatpush1.bf16.msra.mxu1 %v3550_v42  ;;  %v3613_v37 = vld [vmem:[#allocation7 + $0x5e0] ss:$16 sps:$4 sm:$0xff]   ;;  %v3616_v42 = vld [vmem:[#allocation7 + $0x228] ss:$16 sps:$4 sm:$0xff]  }
 0x170   :  { %2085 = vmatprep.subr.bf16.mxu0 %v3555_v43  ;;  %2171 = vmatprep.subr.bf16.mxu1 %v3558_v44  ;;  %v3624_v43 = vld [vmem:[#allocation7 + $0x24c] ss:$16 sps:$4 sm:$0xff]   ;;  %v426_v44 = vmax.f32 %v415_v35, 0.0  ;;  %v3693_v35 = vld [vmem:[#allocation7 + $0x784] ss:$16 sps:$4 sm:$0xff]  }
 0x173   :  { %2086 = vmatpush1.bf16.msra.mxu0 %v3553_v45  ;;  %2172 = vmatpush1.bf16.msra.mxu1 %v3556_v46  ;;  %v4258_v45 = vpack.c.bf16 %v423_v36, %v423_v36  ;;  %v3619_v46 = vld [vmem:[#allocation7 + $0x600] ss:$16 sps:$4 sm:$0xff]   ;;  %v3696_v36 = vld [vmem:[#allocation7 + $0x3cc] ss:$16 sps:$4 sm:$0xff]  }
 0x174   :  { %2087 = vmatprep.subr.bf16.mxu0 %v3561_v48  ;;  %2173 = vmatprep.subr.bf16.mxu1 %v3564_v49  ;;  %v3630_v48 = vld [vmem:[#allocation7 + $0x26c] ss:$16 sps:$4 sm:$0xff]   ;;  %v4260_v49 = vpack.c.bf16 %v426_v44, %v426_v44 }
 0x175   :  { %v3702_v44 = vld [vmem:[#allocation7 + $0x3ec] ss:$16 sps:$4 sm:$0xff]  }
 0x177   :  { %2088 = vmatpush1.bf16.msra.mxu0 %v3559_v51  ;;  %2174 = vmatpush1.bf16.msra.mxu1 %v3562_v52  ;;  %v3628_v51 = vld [vmem:[#allocation7 + $0x268] ss:$16 sps:$4 sm:$0xff]   ;;  %v3633_v52 = vld [vmem:[#allocation7 + $0x644] ss:$16 sps:$4 sm:$0xff]  }
 0x178   :  { %2089 = vmatprep.subr.bf16.mxu0 %v3567_v53  ;;  %2175 = vmatprep.subr.bf16.mxu1 %v3570_v54  ;;  %v3636_v53 = vld [vmem:[#allocation7 + $0x28c] ss:$16 sps:$4 sm:$0xff]   ;;  %v3631_v54 = vld [vmem:[#allocation7 + $0x640] ss:$16 sps:$4 sm:$0xff]  }
 0x17b   :  { %2090 = vmatpush1.bf16.msra.mxu0 %v3565_v55  ;;  %2176 = vmatpush1.bf16.msra.mxu1 %v3568_v56  ;;  %v3634_v55 = vld [vmem:[#allocation7 + $0x288] ss:$16 sps:$4 sm:$0xff]   ;;  %v3639_v56 = vld [vmem:[#allocation7 + $0x664] ss:$16 sps:$4 sm:$0xff]  }
 0x17c   :  { %2091 = vmatprep.subr.bf16.mxu0 %v3573_v57  ;;  %2177 = vmatprep.subr.bf16.mxu1 %v3576_v59  ;;  %v3642_v57 = vld [vmem:[#allocation7 + $0x2ac] ss:$16 sps:$4 sm:$0xff]   ;;  %v3637_v59 = vld [vmem:[#allocation7 + $0x660] ss:$16 sps:$4 sm:$0xff]  }
 0x17f   :  { %2092 = vmatpush1.bf16.msra.mxu0 %v3571_v60  ;;  %2178 = vmatpush1.bf16.msra.mxu1 %v3574_v61  ;;  %v3640_v60 = vld [vmem:[#allocation7 + $0x2a8] ss:$16 sps:$4 sm:$0xff]   ;;  %v3645_v61 = vld [vmem:[#allocation7 + $0x684] ss:$16 sps:$4 sm:$0xff]  }
 0x180   :  { %2093 = vmatprep.subr.bf16.mxu0 %v3579_v62  ;;  %2179 = vmatprep.subr.bf16.mxu1 %v3582_v63  ;;  %v3648_v62 = vld [vmem:[#allocation7 + $0x2cc] ss:$16 sps:$4 sm:$0xff]   ;;  %v3643_v63 = vld [vmem:[#allocation7 + $0x680] ss:$16 sps:$4 sm:$0xff]  }
 0x183   :  { %2094 = vmatpush1.bf16.msra.mxu0 %v3577_v0  ;;  %2180 = vmatpush1.bf16.msra.mxu1 %v3580_v1  ;;  %v3646_v0 = vld [vmem:[#allocation7 + $0x2c8] ss:$16 sps:$4 sm:$0xff]   ;;  %v3651_v1 = vld [vmem:[#allocation7 + $0x6a4] ss:$16 sps:$4 sm:$0xff]  }
 0x184   :  { %2095 = vmatprep.subr.bf16.mxu0 %v3585_v2  ;;  %2181 = vmatprep.subr.bf16.mxu1 %v3588_v3  ;;  %v3654_v2 = vld [vmem:[#allocation7 + $0x2ec] ss:$16 sps:$4 sm:$0xff]   ;;  %v3649_v3 = vld [vmem:[#allocation7 + $0x6a0] ss:$16 sps:$4 sm:$0xff]  }
 0x187   :  { %2096 = vmatpush1.bf16.msra.mxu0 %v3583_v4  ;;  %2182 = vmatpush1.bf16.msra.mxu1 %v3586_v5  ;;  %v3652_v4 = vld [vmem:[#allocation7 + $0x2e8] ss:$16 sps:$4 sm:$0xff]   ;;  %v3657_v5 = vld [vmem:[#allocation7 + $0x6c4] ss:$16 sps:$4 sm:$0xff]  }
 0x188   :  { %2097 = vmatprep.subr.bf16.mxu0 %v3591_v6  ;;  %2183 = vmatprep.subr.bf16.mxu1 %v3594_v9  ;;  %v3660_v6 = vld [vmem:[#allocation7 + $0x30c] ss:$16 sps:$4 sm:$0xff]   ;;  %v3655_v9 = vld [vmem:[#allocation7 + $0x6c0] ss:$16 sps:$4 sm:$0xff]  }
 0x18b   :  { %2098 = vmatpush1.bf16.msra.mxu0 %v3589_v10  ;;  %2184 = vmatpush1.bf16.msra.mxu1 %v3592_v11  ;;  %v3658_v10 = vld [vmem:[#allocation7 + $0x308] ss:$16 sps:$4 sm:$0xff]   ;;  %v3663_v11 = vld [vmem:[#allocation7 + $0x6e4] ss:$16 sps:$4 sm:$0xff]  }
 0x18c   :  { %2099 = vmatprep.subr.bf16.mxu0 %v3597_v12  ;;  %2185 = vmatprep.subr.bf16.mxu1 %v3600_v13  ;;  %v3666_v12 = vld [vmem:[#allocation7 + $0x32c] ss:$16 sps:$4 sm:$0xff]   ;;  %v3661_v13 = vld [vmem:[#allocation7 + $0x6e0] ss:$16 sps:$4 sm:$0xff]  }
 0x18f   :  { %2100 = vmatpush1.bf16.msra.mxu0 %v3595_v16  ;;  %2186 = vmatpush1.bf16.msra.mxu1 %v3598_v17  ;;  %v3669_v16 = vld [vmem:[#allocation7 + $0x704] ss:$16 sps:$4 sm:$0xff]   ;;  %v3672_v17 = vld [vmem:[#allocation7 + $0x34c] ss:$16 sps:$4 sm:$0xff]  }
 0x190   :  { %2101 = vmatprep.subr.bf16.mxu0 %v3603_v18  ;;  %2187 = vmatprep.subr.bf16.mxu1 %v3606_v19  ;;  %v3667_v18 = vld [vmem:[#allocation7 + $0x700] ss:$16 sps:$4 sm:$0xff]   ;;  %v3670_v19 = vld [vmem:[#allocation7 + $0x348] ss:$16 sps:$4 sm:$0xff]  }
 0x193   :  { %2102 = vmatpush1.bf16.msra.mxu0 %v3601_v22  ;;  %2188 = vmatpush1.bf16.msra.mxu1 %v3604_v23  ;;  %v3673_v22 = vld [vmem:[#allocation7 + $0x720] ss:$16 sps:$4 sm:$0xff]   ;;  %v3676_v23 = vld [vmem:[#allocation7 + $0x368] ss:$16 sps:$4 sm:$0xff]  }
 0x194   :  { %2103 = vmatprep.subr.bf16.mxu0 %v3609_v24  ;;  %2198 = vmatprep.subr.bf16.mxu1 %v3612_v25  ;;  %v3681_v24 = vld [vmem:[#allocation7 + $0x744] ss:$16 sps:$4 sm:$0xff]   ;;  %v3684_v25 = vld [vmem:[#allocation7 + $0x38c] ss:$16 sps:$4 sm:$0xff]  }
 0x196   :  { %2190 = vmatmul.mubr.bf16.vlgmr.msra.gmra.mrb[4].mxu1 %v4230_v58  ;;  %v3627_v58 = vld [vmem:[#allocation7 + $0x624] ss:$16 sps:$4 sm:$0xff]  }
 0x197   :  { %2104 = vmatpush1.bf16.msra.mxu0 %v3607_v31  ;;  %2199 = vmatpush1.bf16.msra.mxu1 %v3610_v32  ;;  %v3687_v31 = vld [vmem:[#allocation7 + $0x764] ss:$16 sps:$4 sm:$0xff]   ;;  %v3690_v32 = vld [vmem:[#allocation7 + $0x3ac] ss:$16 sps:$4 sm:$0xff]  }
 0x198   :  { %2230 = vmatprep.mubr.bf16.mxu1 %v4236_v8  ;;  %2105 = vmatprep.subr.bf16.mxu0 %v3615_v33  ;;  %v3625_v8 = vld [vmem:[#allocation7 + $0x620] ss:$16 sps:$4 sm:$0xff]  }
 0x199   :  { %2200 = vmatprep.subr.bf16.mxu1 %v3618_v34  ;;  %v3685_v33 = vld [vmem:[#allocation7 + $0x760] ss:$16 sps:$4 sm:$0xff]   ;;  %v3688_v34 = vld [vmem:[#allocation7 + $0x3a8] ss:$16 sps:$4 sm:$0xff]  }
 0x19b   :  { %2106 = vmatpush1.bf16.msra.mxu0 %v3613_v37  ;;  %2201 = vmatpush1.bf16.msra.mxu1 %v3616_v42  ;;  %v157_v37 = vsub.s32 6, %v4208_v38  ;;  %v3691_v42 = vld [vmem:[#allocation7 + $0x780] ss:$16 sps:$4 sm:$0xff]   ;;  %v3916_v38 = vld [vmem:[#allocation10 + $0x38] sm:$0xff]  }
 0x19c   :  { %2116 = vmatprep.subr.bf16.mxu0 %v3621_v14  ;;  %2202 = vmatprep.subr.bf16.mxu1 %v3624_v43  ;;  %v3694_v14 = vld [vmem:[#allocation7 + $0x3c8] ss:$16 sps:$4 sm:$0xff]   ;;  %v3699_v43 = vld [vmem:[#allocation7 + $0x7a4] ss:$16 sps:$4 sm:$0xff]  }
 0x19e   :  { %2108 = vmatmul.mubr.bf16.vlgmr.msra.gmra.mrb[16].mxu0 %v4258_v45 }
 0x19f   :  { %2117 = vmatpush1.bf16.msra.mxu0 %v3619_v46  ;;  %2203 = vmatpush1.bf16.msra.mxu1 %v3622_v30  ;;  %v158_v46 = vrot.slane %v4213_v40, %v157_v37  ;;  %v3697_v30 = vld [vmem:[#allocation7 + $0x7a0] ss:$16 sps:$4 sm:$0xff]   ;;  %v3742_v37 = vld [vmem:[#allocation7 + $0x568] ss:$16 sps:$4 sm:$0xff]  }
 0x1a0   :  { %2118 = vmatprep.subr.bf16.mxu0 %v3627_v58  ;;  %2204 = vmatprep.subr.bf16.mxu1 %v3630_v48  ;;  %v3700_v58 = vld [vmem:[#allocation7 + $0x3e8] ss:$16 sps:$4 sm:$0xff]   ;;  %v3705_v48 = vld [vmem:[#allocation7 + $0x7c4] ss:$16 sps:$4 sm:$0xff]   ;;  %v3709_v40 = vld [vmem:[#allocation7 + $0x7e0] ss:$16 sps:$4 sm:$0xff]  }
 0x1a1   :  { %2148 = vmatprep.mubr.bf16.mxu0 %v4260_v49 }
 0x1a3   :  { %2119 = vmatpush1.bf16.msra.mxu0 %v3625_v8  ;;  %2205 = vmatpush1.bf16.msra.mxu1 %v3628_v51  ;;  %v3708_v8 = vld [vmem:[#allocation7 + $0x40c] ss:$16 sps:$4 sm:$0xff]   ;;  %v413_v51 = vadd.f32 %v4246_v29, %v158_v46  ;;  %v3835_v46 = vld [vmem:[#allocation9 + $0xa0] ss:$8 sps:$4 sm:$0xff]  }
 0x1a4   :  { %2120 = vmatprep.subr.bf16.mxu0 %v3633_v52  ;;  %2206 = vmatprep.subr.bf16.mxu1 %v3636_v53  ;;  %v3703_v52 = vld [vmem:[#allocation7 + $0x7c0] ss:$16 sps:$4 sm:$0xff]   ;;  %v3706_v53 = vld [vmem:[#allocation7 + $0x408] ss:$16 sps:$4 sm:$0xff]   ;;  %v3807_v29 = vld [vmem:[#allocation9 + $0x4] ss:$8 sps:$4 sm:$0xff]  }
 0x1a7   :  { %2121 = vmatpush1.bf16.msra.mxu0 %v3631_v54  ;;  %2207 = vmatpush1.bf16.msra.mxu1 %v3634_v55  ;;  %v3711_v54 = vld [vmem:[#allocation7 + $0x7e4] ss:$16 sps:$4 sm:$0xff]   ;;  %v3714_v55 = vld [vmem:[#allocation7 + $0x42c] ss:$16 sps:$4 sm:$0xff]  }
 0x1a8   :  { %2122 = vmatprep.subr.bf16.mxu0 %v3639_v56  ;;  %2208 = vmatprep.subr.bf16.mxu1 %v3642_v57  ;;  %v425_v56 = vmax.f32 %v413_v51, 0.0  ;;  %v3712_v57 = vld [vmem:[#allocation7 + $0x428] ss:$16 sps:$4 sm:$0xff]   ;;  %v3753_v51 = vld [vmem:[#allocation7 + $0x5cc] ss:$16 sps:$4 sm:$0xff]  }
 0x1ab   :  { %2123 = vmatpush1.bf16.msra.mxu0 %v3637_v59  ;;  %2209 = vmatpush1.bf16.msra.mxu1 %v3640_v60  ;;  %v3717_v59 = vld [vmem:[#allocation7 + $0x44c] ss:$16 sps:$4 sm:$0xff]   ;;  %v4269_v60 = vpack.c.bf16 %v425_v56, %v425_v56 }
 0x1ac   :  { %2124 = vmatprep.subr.bf16.mxu0 %v3645_v61  ;;  %2210 = vmatprep.subr.bf16.mxu1 %v3648_v62  ;;  %v3715_v61 = vld [vmem:[#allocation7 + $0x448] ss:$16 sps:$4 sm:$0xff]   ;;  %v3846_v56 = vld [vmem:[#allocation9 + $0xd4] ss:$8 sps:$4 sm:$0xff]  }
 0x1ad   :  { %v3805_v62 = vld [vmem:[#allocation9] ss:$8 sps:$4 sm:$0xff]  }
 0x1af   :  { %2125 = vmatpush1.bf16.msra.mxu0 %v3643_v63  ;;  %2211 = vmatpush1.bf16.msra.mxu1 %v3646_v0  ;;  %v3720_v63 = vld [vmem:[#allocation7 + $0x46c] ss:$16 sps:$4 sm:$0xff]   ;;  %v3718_v0 = vld [vmem:[#allocation7 + $0x468] ss:$16 sps:$4 sm:$0xff]  }
 0x1b0   :  { %2126 = vmatprep.subr.bf16.mxu0 %v3651_v1  ;;  %2212 = vmatprep.subr.bf16.mxu1 %v3654_v2  ;;  %v3723_v1 = vld [vmem:[#allocation7 + $0x48c] ss:$16 sps:$4 sm:$0xff]  }
 0x1b1   :  { %v3813_v2 = vld [vmem:[#allocation9 + $0x24] ss:$8 sps:$4 sm:$0xff]  }
 0x1b3   :  { %2127 = vmatpush1.bf16.msra.mxu0 %v3649_v3  ;;  %2213 = vmatpush1.bf16.msra.mxu1 %v3652_v4  ;;  %v3721_v3 = vld [vmem:[#allocation7 + $0x488] ss:$16 sps:$4 sm:$0xff]  }
 0x1b4   :  { %2128 = vmatprep.subr.bf16.mxu0 %v3657_v5  ;;  %2214 = vmatprep.subr.bf16.mxu1 %v3660_v6  ;;  %v3811_v4 = vld [vmem:[#allocation9 + $0x20] ss:$8 sps:$4 sm:$0xff]   ;;  %v3726_v5 = vld [vmem:[#allocation7 + $0x4ac] ss:$16 sps:$4 sm:$0xff]  }
 0x1b5   :  { %v3816_v6 = vld [vmem:[#allocation9 + $0x34] ss:$8 sps:$4 sm:$0xff]  }
 0x1b7   :  { %2129 = vmatpush1.bf16.msra.mxu0 %v3655_v9  ;;  %2215 = vmatpush1.bf16.msra.mxu1 %v3658_v10  ;;  %v3724_v9 = vld [vmem:[#allocation7 + $0x4a8] ss:$16 sps:$4 sm:$0xff]  }
 0x1b8   :  { %2130 = vmatprep.subr.bf16.mxu0 %v3663_v11  ;;  %2216 = vmatprep.subr.bf16.mxu1 %v3666_v12  ;;  %v3814_v10 = vld [vmem:[#allocation9 + $0x30] ss:$8 sps:$4 sm:$0xff]   ;;  %v3729_v11 = vld [vmem:[#allocation7 + $0x4cc] ss:$16 sps:$4 sm:$0xff]  }
 0x1b9   :  { %v3819_v12 = vld [vmem:[#allocation9 + $0x44] ss:$8 sps:$4 sm:$0xff]  }
 0x1bb   :  { %2131 = vmatpush1.bf16.msra.mxu0 %v3661_v13  ;;  %2217 = vmatpush1.bf16.msra.mxu1 %v3664_v15  ;;  %v3727_v13 = vld [vmem:[#allocation7 + $0x4c8] ss:$16 sps:$4 sm:$0xff]  }
 0x1bc   :  { %2132 = vmatprep.subr.bf16.mxu0 %v3669_v16  ;;  %2218 = vmatprep.subr.bf16.mxu1 %v3672_v17  ;;  %v3817_v15 = vld [vmem:[#allocation9 + $0x40] ss:$8 sps:$4 sm:$0xff]   ;;  %v3732_v16 = vld [vmem:[#allocation7 + $0x4ec] ss:$16 sps:$4 sm:$0xff]  }
 0x1bd   :  { %v3822_v17 = vld [vmem:[#allocation9 + $0x54] ss:$8 sps:$4 sm:$0xff]  }
 0x1bf   :  { %2133 = vmatpush1.bf16.msra.mxu0 %v3667_v18  ;;  %2219 = vmatpush1.bf16.msra.mxu1 %v3670_v19  ;;  %v3730_v18 = vld [vmem:[#allocation7 + $0x4e8] ss:$16 sps:$4 sm:$0xff]  }
 0x1c0   :  { %2134 = vmatprep.subr.bf16.mxu0 %v3675_v20  ;;  %2220 = vmatprep.subr.bf16.mxu1 %v3678_v21  ;;  %v3820_v19 = vld [vmem:[#allocation9 + $0x50] ss:$8 sps:$4 sm:$0xff]   ;;  %v3735_v20 = vld [vmem:[#allocation7 + $0x50c] ss:$16 sps:$4 sm:$0xff]  }
 0x1c1   :  { %v3825_v21 = vld [vmem:[#allocation9 + $0x64] ss:$8 sps:$4 sm:$0xff]  }
 0x1c3   :  { %2135 = vmatpush1.bf16.msra.mxu0 %v3673_v22  ;;  %2221 = vmatpush1.bf16.msra.mxu1 %v3676_v23  ;;  %v3733_v22 = vld [vmem:[#allocation7 + $0x508] ss:$16 sps:$4 sm:$0xff]  }
 0x1c4   :  { %2136 = vmatprep.subr.bf16.mxu0 %v3681_v24  ;;  %2222 = vmatprep.subr.bf16.mxu1 %v3684_v25  ;;  %v3823_v23 = vld [vmem:[#allocation9 + $0x60] ss:$8 sps:$4 sm:$0xff]   ;;  %v3738_v24 = vld [vmem:[#allocation7 + $0x52c] ss:$16 sps:$4 sm:$0xff]  }
 0x1c5   :  { %v3828_v25 = vld [vmem:[#allocation9 + $0x74] ss:$8 sps:$4 sm:$0xff]  }
 0x1c7   :  { %2137 = vmatpush1.bf16.msra.mxu0 %v3679_v27  ;;  %2223 = vmatpush1.bf16.msra.mxu1 %v3682_v28  ;;  %v3736_v27 = vld [vmem:[#allocation7 + $0x528] ss:$16 sps:$4 sm:$0xff]  }
 0x1c8   :  { %2138 = vmatprep.subr.bf16.mxu0 %v3687_v31  ;;  %2224 = vmatprep.subr.bf16.mxu1 %v3690_v32  ;;  %v3826_v28 = vld [vmem:[#allocation9 + $0x70] ss:$8 sps:$4 sm:$0xff]   ;;  %v3741_v31 = vld [vmem:[#allocation7 + $0x54c] ss:$16 sps:$4 sm:$0xff]  }
 0x1c9   :  { %v3831_v32 = vld [vmem:[#allocation9 + $0x84] ss:$8 sps:$4 sm:$0xff]  }
 0x1cb   :  { %2139 = vmatpush1.bf16.msra.mxu0 %v3685_v33  ;;  %2225 = vmatpush1.bf16.msra.mxu1 %v3688_v34  ;;  %v3739_v33 = vld [vmem:[#allocation7 + $0x548] ss:$16 sps:$4 sm:$0xff]  }
 0x1cc   :  { %2140 = vmatprep.subr.bf16.mxu0 %v3693_v35  ;;  %2226 = vmatprep.subr.bf16.mxu1 %v3696_v36  ;;  %v3829_v34 = vld [vmem:[#allocation9 + $0x80] ss:$8 sps:$4 sm:$0xff]   ;;  %v3744_v35 = vld [vmem:[#allocation7 + $0x56c] ss:$16 sps:$4 sm:$0xff]  }
 0x1cd   :  { %v3834_v36 = vld [vmem:[#allocation9 + $0x94] ss:$8 sps:$4 sm:$0xff]  }
 0x1cf   :  { %2141 = vmatpush1.bf16.msra.mxu0 %v3691_v42  ;;  %2227 = vmatpush1.bf16.msra.mxu1 %v3694_v14  ;;  %v3832_v42 = vld [vmem:[#allocation9 + $0x90] ss:$8 sps:$4 sm:$0xff]   ;;  %v3747_v14 = vld [vmem:[#allocation7 + $0x58c] ss:$16 sps:$4 sm:$0xff]  }
 0x1d0   :  { %2142 = vmatprep.subr.bf16.mxu0 %v3699_v43  ;;  %2228 = vmatprep.subr.bf16.mxu1 %v3702_v44  ;;  %v3837_v43 = vld [vmem:[#allocation9 + $0xa4] ss:$8 sps:$4 sm:$0xff]   ;;  %v3745_v44 = vld [vmem:[#allocation7 + $0x588] ss:$16 sps:$4 sm:$0xff]  }
 0x1d3   :  { %2143 = vmatpush1.bf16.msra.mxu0 %v3697_v30  ;;  %2229 = vmatpush1.bf16.msra.mxu1 %v3700_v58  ;;  %v3750_v30 = vld [vmem:[#allocation7 + $0x5ac] ss:$16 sps:$4 sm:$0xff]  }
 0x1d4   :  { %2144 = vmatprep.subr.bf16.mxu0 %v3705_v48  ;;  %2239 = vmatprep.subr.bf16.mxu1 %v3708_v8  ;;  %v3840_v58 = vld [vmem:[#allocation9 + $0xb4] ss:$8 sps:$4 sm:$0xff]   ;;  %v3748_v48 = vld [vmem:[#allocation7 + $0x5a8] ss:$16 sps:$4 sm:$0xff]  }
 0x1d5   :  { %v3838_v8 = vld [vmem:[#allocation9 + $0xb0] ss:$8 sps:$4 sm:$0xff]  }
 0x1d6   :  { %2231 = vmatmul.mubr.bf16.vlgmr.msra.gmra.mrb[4].mxu1 %v4234_v7  ;;  %v3810_v7 = vld [vmem:[#allocation9 + $0x14] ss:$8 sps:$4 sm:$0xff]  }
 0x1d7   :  { %2145 = vmatpush1.bf16.msra.mxu0 %v3703_v52  ;;  %2240 = vmatpush1.bf16.msra.mxu1 %v3706_v53  ;;  %v3843_v52 = vld [vmem:[#allocation9 + $0xc4] ss:$8 sps:$4 sm:$0xff]   ;;  %v3751_v53 = vld [vmem:[#allocation7 + $0x5c8] ss:$16 sps:$4 sm:$0xff]  }
 0x1d8   :  { %2271 = vmatprep.mubr.bf16.mxu1 %v4243_v26  ;;  %2146 = vmatprep.subr.bf16.mxu0 %v3711_v54  ;;  %v3808_v26 = vld [vmem:[#allocation9 + $0x10] ss:$8 sps:$4 sm:$0xff]   ;;  %v3841_v54 = vld [vmem:[#allocation9 + $0xc0] ss:$8 sps:$4 sm:$0xff]  }
 0x1d9   :  { %2241 = vmatprep.subr.bf16.mxu1 %v3714_v55  ;;  %v3756_v55 = vld [vmem:[#allocation7 + $0x5ec] ss:$16 sps:$4 sm:$0xff]  }
 0x1db   :  { %2147 = vmatpush1.bf16.msra.mxu0 %v3709_v40  ;;  %2242 = vmatpush1.bf16.msra.mxu1 %v3712_v57  ;;  %v3754_v40 = vld [vmem:[#allocation7 + $0x5e8] ss:$16 sps:$4 sm:$0xff]  }
 0x1dc   :  { %2243 = vmatprep.subr.bf16.mxu1 %v3717_v59  ;;  %2725 = vmatprep.subr.bf16.mxu0 %v3807_v29  ;;  %v3844_v57 = vld [vmem:[#allocation9 + $0xd0] ss:$8 sps:$4 sm:$0xff]   ;;  %v3759_v59 = vld [vmem:[#allocation7 + $0x60c] ss:$16 sps:$4 sm:$0xff]  }
 0x1dd   :  { %v3757_v29 = vld [vmem:[#allocation7 + $0x608] ss:$16 sps:$4 sm:$0xff]  }
 0x1de   :  { %2149 = vmatmul.mubr.bf16.vlgmr.msra.gmra.mrb[16].mxu0 %v4269_v60 }
 0x1df   :  { %2244 = vmatpush1.bf16.msra.mxu1 %v3715_v61  ;;  %2726 = vmatpush1.bf16.msra.mxu0 %v3805_v62  ;;  %v3762_v61 = vld [vmem:[#allocation7 + $0x62c] ss:$16 sps:$4 sm:$0xff]   ;;  %v3760_v62 = vld [vmem:[#allocation7 + $0x628] ss:$16 sps:$4 sm:$0xff]  }
 0x1e0   :  { %2245 = vmatprep.subr.bf16.mxu1 %v3720_v63  ;;  %2727 = vmatprep.subr.bf16.mxu0 %v3810_v7  ;;  %v3765_v63 = vld [vmem:[#allocation7 + $0x64c] ss:$16 sps:$4 sm:$0xff]   ;;  %v3763_v7 = vld [vmem:[#allocation7 + $0x648] ss:$16 sps:$4 sm:$0xff]  }
 0x1e3   :  { %2246 = vmatpush1.bf16.msra.mxu1 %v3718_v0  ;;  %2728 = vmatpush1.bf16.msra.mxu0 %v3808_v26  ;;  %v3768_v0 = vld [vmem:[#allocation7 + $0x66c] ss:$16 sps:$4 sm:$0xff]   ;;  %v3766_v26 = vld [vmem:[#allocation7 + $0x668] ss:$16 sps:$4 sm:$0xff]  }
 0x1e4   :  { %2247 = vmatprep.subr.bf16.mxu1 %v3723_v1  ;;  %2729 = vmatprep.subr.bf16.mxu0 %v3813_v2  ;;  %v3771_v1 = vld [vmem:[#allocation7 + $0x68c] ss:$16 sps:$4 sm:$0xff]   ;;  %v3769_v2 = vld [vmem:[#allocation7 + $0x688] ss:$16 sps:$4 sm:$0xff]  }
 0x1e7   :  { %2248 = vmatpush1.bf16.msra.mxu1 %v3721_v3  ;;  %2730 = vmatpush1.bf16.msra.mxu0 %v3811_v4  ;;  %v3774_v3 = vld [vmem:[#allocation7 + $0x6ac] ss:$16 sps:$4 sm:$0xff]  }
 0x1e8   :  { %2249 = vmatprep.subr.bf16.mxu1 %v3726_v5  ;;  %2731 = vmatprep.subr.bf16.mxu0 %v3816_v6  ;;  %v3777_v4 = vld [vmem:[#allocation7 + $0x6cc] ss:$16 sps:$4 sm:$0xff]  }
 0x1eb   :  { %2250 = vmatpush1.bf16.msra.mxu1 %v3724_v9  ;;  %2732 = vmatpush1.bf16.msra.mxu0 %v3814_v10  ;;  %v3775_v9 = vld [vmem:[#allocation7 + $0x6c8] ss:$16 sps:$4 sm:$0xff]  }
 0x1ec   :  { %2251 = vmatprep.subr.bf16.mxu1 %v3729_v11  ;;  %2733 = vmatprep.subr.bf16.mxu0 %v3819_v12  ;;  %v3780_v11 = vld [vmem:[#allocation7 + $0x6ec] ss:$16 sps:$4 sm:$0xff]   ;;  %v3778_v12 = vld [vmem:[#allocation7 + $0x6e8] ss:$16 sps:$4 sm:$0xff]  }
 0x1ef   :  { %2252 = vmatpush1.bf16.msra.mxu1 %v3727_v13  ;;  %2734 = vmatpush1.bf16.msra.mxu0 %v3817_v15  ;;  %v3783_v13 = vld [vmem:[#allocation7 + $0x70c] ss:$16 sps:$4 sm:$0xff]  }
 0x1f0   :  { %2253 = vmatprep.subr.bf16.mxu1 %v3732_v16  ;;  %2735 = vmatprep.subr.bf16.mxu0 %v3822_v17  ;;  %v3849_v15 = vld [vmem:[#allocation9 + $0xe4] ss:$8 sps:$4 sm:$0xff]   ;;  %v3847_v16 = vld [vmem:[#allocation9 + $0xe0] ss:$8 sps:$4 sm:$0xff]  }
 0x1f1   :  { %v3781_v17 = vld [vmem:[#allocation7 + $0x708] ss:$16 sps:$4 sm:$0xff]  }
 0x1f3   :  { %2254 = vmatpush1.bf16.msra.mxu1 %v3730_v18  ;;  %2736 = vmatpush1.bf16.msra.mxu0 %v3820_v19  ;;  %v3786_v18 = vld [vmem:[#allocation7 + $0x72c] ss:$16 sps:$4 sm:$0xff]  }
 0x1f4   :  { %2255 = vmatprep.subr.bf16.mxu1 %v3735_v20  ;;  %2737 = vmatprep.subr.bf16.mxu0 %v3825_v21  ;;  %v3852_v19 = vld [vmem:[#allocation9 + $0xf4] ss:$8 sps:$4 sm:$0xff]   ;;  %v3850_v20 = vld [vmem:[#allocation9 + $0xf0] ss:$8 sps:$4 sm:$0xff]  }
 0x1f5   :  { %v3784_v21 = vld [vmem:[#allocation7 + $0x728] ss:$16 sps:$4 sm:$0xff]  }
 0x1f7   :  { %2256 = vmatpush1.bf16.msra.mxu1 %v3733_v22  ;;  %2738 = vmatpush1.bf16.msra.mxu0 %v3823_v23  ;;  %v3789_v22 = vld [vmem:[#allocation7 + $0x74c] ss:$16 sps:$4 sm:$0xff]  }
 0x1f8   :  { %2257 = vmatprep.subr.bf16.mxu1 %v3738_v24  ;;  %2739 = vmatprep.subr.bf16.mxu0 %v3828_v25  ;;  %v3855_v23 = vld [vmem:[#allocation9 + $0x104] ss:$8 sps:$4 sm:$0xff]   ;;  %v3787_v24 = vld [vmem:[#allocation7 + $0x748] ss:$16 sps:$4 sm:$0xff]  }
 0x1f9   :  { %v3792_v25 = vld [vmem:[#allocation7 + $0x76c] ss:$16 sps:$4 sm:$0xff]  }
 0x1fb   :  { %2258 = vmatpush1.bf16.msra.mxu1 %v3736_v27  ;;  %2740 = vmatpush1.bf16.msra.mxu0 %v3826_v28  ;;  %v3790_v27 = vld [vmem:[#allocation7 + $0x768] ss:$16 sps:$4 sm:$0xff]   ;;  %v3795_v28 = vld [vmem:[#allocation7 + $0x78c] ss:$16 sps:$4 sm:$0xff]  }
 0x1fc   :  { %2259 = vmatprep.subr.bf16.mxu1 %v3741_v31  ;;  %2741 = vmatprep.subr.bf16.mxu0 %v3831_v32  ;;  %v3793_v31 = vld [vmem:[#allocation7 + $0x788] ss:$16 sps:$4 sm:$0xff]   ;;  %v3798_v32 = vld [vmem:[#allocation7 + $0x7ac] ss:$16 sps:$4 sm:$0xff]  }
 0x1ff   :  { %2260 = vmatpush1.bf16.msra.mxu1 %v3739_v33  ;;  %2742 = vmatpush1.bf16.msra.mxu0 %v3829_v34  ;;  %v3796_v33 = vld [vmem:[#allocation7 + $0x7a8] ss:$16 sps:$4 sm:$0xff]   ;;  %v3801_v34 = vld [vmem:[#allocation7 + $0x7cc] ss:$16 sps:$4 sm:$0xff]  }
 0x200   :  { %2261 = vmatprep.subr.bf16.mxu1 %v3744_v35  ;;  %2743 = vmatprep.subr.bf16.mxu0 %v3834_v36  ;;  %v3799_v35 = vld [vmem:[#allocation7 + $0x7c8] ss:$16 sps:$4 sm:$0xff]   ;;  %v3804_v36 = vld [vmem:[#allocation7 + $0x7ec] ss:$16 sps:$4 sm:$0xff]  }
 0x203   :  { %2262 = vmatpush1.bf16.msra.mxu1 %v3742_v37  ;;  %2744 = vmatpush1.bf16.msra.mxu0 %v3832_v42  ;;  %v3802_v37 = vld [vmem:[#allocation7 + $0x7e8] ss:$16 sps:$4 sm:$0xff]  }
 0x204   :  { %2263 = vmatprep.subr.bf16.mxu1 %v3747_v14  ;;  %2745 = vmatprep.subr.bf16.mxu0 %v3837_v43  ;;  %v4278_v42 = vld [vmem:[%s4305_s4] sm:$0xf] }
 0x205   :  { %v696_v14 = vrot.slane %v4278_v42, %v4211_v39  ;;  %v700_v43 = vrot.slane %v4278_v42, %v4216_v41 }
 0x207   :  { %2264 = vmatpush1.bf16.msra.mxu1 %v3745_v44  ;;  %2746 = vmatpush1.bf16.msra.mxu0 %v3835_v46 }
 0x208   :  { %2265 = vmatprep.subr.bf16.mxu1 %v3750_v30  ;;  %2747 = vmatprep.subr.bf16.mxu0 %v3840_v58 }
 0x20b   :  { %2266 = vmatpush1.bf16.msra.mxu1 %v3748_v48  ;;  %2748 = vmatpush1.bf16.msra.mxu0 %v3838_v8  ;;  %v3901_v8 = vld [vmem:[#allocation10 + $0x40] sm:$0xff]  }
 0x20c   :  { %2267 = vmatprep.subr.bf16.mxu1 %v3753_v51  ;;  %2749 = vmatprep.subr.bf16.mxu0 %v3843_v52  ;;  %v3902_v51 = vld [vmem:[#allocation10] sm:$0xff]   ;;  %v3903_v52 = vld [vmem:[#allocation10 + $0x48] sm:$0xff]  }
 0x20f   :  { %2268 = vmatpush1.bf16.msra.mxu1 %v3751_v53  ;;  %2750 = vmatpush1.bf16.msra.mxu0 %v3841_v54 }
 0x210   :  { %2269 = vmatprep.subr.bf16.mxu1 %v3756_v55  ;;  %2751 = vmatprep.subr.bf16.mxu0 %v3846_v56 }
 0x213   :  { %2270 = vmatpush1.bf16.msra.mxu1 %v3754_v40  ;;  %2752 = vmatpush1.bf16.msra.mxu0 %v3844_v57  ;;  %v3904_v40 = vld [vmem:[#allocation10 + $0x8] sm:$0xff]   ;;  %v3905_v57 = vld [vmem:[#allocation10 + $0x50] sm:$0xff]  }
 0x214   :  { %2280 = vmatprep.subr.bf16.mxu1 %v3759_v59  ;;  %2753 = vmatprep.subr.bf16.mxu0 %v3849_v15  ;;  %v3871_v15 = vld [vmem:[#allocation9 + $0x160] ss:$8 sps:$4 sm:$0xff]  }
 0x216   :  { %2272 = vmatmul.mubr.bf16.vlgmr.msra.gmra.mrb[4].mxu1 %v4258_v45  ;;  %v3772_v45 = vld [vmem:[#allocation7 + $0x6a8] ss:$16 sps:$4 sm:$0xff]  }
 0x217   :  { %2281 = vmatpush1.bf16.msra.mxu1 %v3757_v29  ;;  %2312 = vmatprep.mubr.bf16.mxu1 %v4260_v49  ;;  %v3853_v29 = vld [vmem:[#allocation9 + $0x100] ss:$8 sps:$4 sm:$0xff]  }
 0x218   :  { %2282 = vmatprep.subr.bf16.mxu1 %v3762_v61  ;;  %2754 = vmatpush1.bf16.msra.mxu0 %v3847_v16  ;;  %v3876_v16 = vld [vmem:[#allocation9 + $0x174] ss:$8 sps:$4 sm:$0xff]  }
 0x219   :  { %2755 = vmatprep.subr.bf16.mxu0 %v3852_v19  ;;  %v3877_v19 = vld [vmem:[#allocation9 + $0x180] ss:$8 sps:$4 sm:$0xff]  }
 0x21b   :  { %2283 = vmatpush1.bf16.msra.mxu1 %v3760_v62  ;;  %v3858_v62 = vld [vmem:[#allocation9 + $0x114] ss:$8 sps:$4 sm:$0xff]  }
 0x21c   :  { %2284 = vmatprep.subr.bf16.mxu1 %v3765_v63  ;;  %2756 = vmatpush1.bf16.msra.mxu0 %v3850_v20  ;;  %v3906_v63 = vld [vmem:[#allocation10 + $0x10] sm:$0xff]  }
 0x21d   :  { %2766 = vmatprep.subr.bf16.mxu0 %v3855_v23  ;;  %v3882_v20 = vld [vmem:[#allocation9 + $0x194] ss:$8 sps:$4 sm:$0xff]   ;;  %v3883_v23 = vld [vmem:[#allocation9 + $0x1a0] ss:$8 sps:$4 sm:$0xff]  }
 0x21f   :  { %2285 = vmatpush1.bf16.msra.mxu1 %v3763_v7  ;;  %v3907_v7 = vld [vmem:[#allocation10 + $0x58] sm:$0xff]  }
 0x220   :  { %2286 = vmatprep.subr.bf16.mxu1 %v3768_v0  ;;  %v3856_v0 = vld [vmem:[#allocation9 + $0x110] ss:$8 sps:$4 sm:$0xff]  }
 0x223   :  { %2287 = vmatpush1.bf16.msra.mxu1 %v3766_v26  ;;  %v3861_v26 = vld [vmem:[#allocation9 + $0x124] ss:$8 sps:$4 sm:$0xff]  }
 0x224   :  { %2288 = vmatprep.subr.bf16.mxu1 %v3771_v1  ;;  %v3908_v1 = vld [vmem:[#allocation10 + $0x18] sm:$0xff]  }
 0x227   :  { %2289 = vmatpush1.bf16.msra.mxu1 %v3769_v2  ;;  %v3909_v2 = vld [vmem:[#allocation10 + $0x60] sm:$0xff]  }
 0x228   :  { %2290 = vmatprep.subr.bf16.mxu1 %v3774_v3  ;;  %v3859_v3 = vld [vmem:[#allocation9 + $0x120] ss:$8 sps:$4 sm:$0xff]  }
 0x229   :  { %v2027_v49 = vpop.f32.mrb[0].mxu1 }
 0x22a   :  { %v2029_v5 = vpop.f32.mrb[1].mxu1  ;;  %v2028_v44 = vadd.f32 %v2027_v49, %v696_v14  ;;  %v3911_v49 = vld [vmem:[#allocation10 + $0x68] sm:$0xff]   ;;  %v708_v14 = vrot.slane %v4278_v42, %v145_v50 }
 0x22b   :  { %2291 = vmatpush1.bf16.msra.mxu1 %v3772_v45  ;;  %v2031_v6 = vpop.f32.mrb[2].mxu1  ;;  %v2030_v46 = vadd.f32 %v2029_v5, %v700_v43  ;;  %v3864_v45 = vld [vmem:[#allocation9 + $0x134] ss:$8 sps:$4 sm:$0xff]   ;;  %v3862_v5 = vld [vmem:[#allocation9 + $0x130] ss:$8 sps:$4 sm:$0xff]  }
 0x22c   :  { %v2032_v10 = vpop.f32.mrb[3].mxu1  ;;  %2292 = vmatprep.subr.bf16.mxu1 %v3777_v4  ;;  %v3910_v4 = vld [vmem:[#allocation10 + $0x20] sm:$0xff]   ;;  %v2393_v50 = vld [vmem:[%s4307_s6] sm:$0x3] }
 0x22d   :  { %v3867_v6 = vld [vmem:[#allocation9 + $0x144] ss:$8 sps:$4 sm:$0xff]   ;;  %v3865_v10 = vld [vmem:[#allocation9 + $0x140] ss:$8 sps:$4 sm:$0xff]  }
 0x22f   :  { %2293 = vmatpush1.bf16.msra.mxu1 %v3775_v9  ;;  %v3912_v9 = vld [vmem:[#allocation10 + $0x28] sm:$0xff]  }
 0x230   :  { %2294 = vmatprep.subr.bf16.mxu1 %v3780_v11  ;;  %v3870_v11 = vld [vmem:[#allocation9 + $0x154] ss:$8 sps:$4 sm:$0xff]  }
 0x233   :  { %2295 = vmatpush1.bf16.msra.mxu1 %v3778_v12  ;;  %v3868_v12 = vld [vmem:[#allocation9 + $0x150] ss:$8 sps:$4 sm:$0xff]  }
 0x234   :  { %2296 = vmatprep.subr.bf16.mxu1 %v3783_v13  ;;  %v3873_v13 = vld [vmem:[#allocation9 + $0x164] ss:$8 sps:$4 sm:$0xff]  }
 0x237   :  { %2297 = vmatpush1.bf16.msra.mxu1 %v3781_v17  ;;  %v3874_v17 = vld [vmem:[#allocation9 + $0x170] ss:$8 sps:$4 sm:$0xff]  }
 0x238   :  { %2298 = vmatprep.subr.bf16.mxu1 %v3786_v18  ;;  %v3879_v18 = vld [vmem:[#allocation9 + $0x184] ss:$8 sps:$4 sm:$0xff]  }
 0x23b   :  { %2299 = vmatpush1.bf16.msra.mxu1 %v3784_v21  ;;  %v3880_v21 = vld [vmem:[#allocation9 + $0x190] ss:$8 sps:$4 sm:$0xff]  }
 0x23c   :  { %2300 = vmatprep.subr.bf16.mxu1 %v3789_v22  ;;  %v3885_v22 = vld [vmem:[#allocation9 + $0x1a4] ss:$8 sps:$4 sm:$0xff]  }
 0x23f   :  { %2301 = vmatpush1.bf16.msra.mxu1 %v3787_v24  ;;  %v3888_v24 = vld [vmem:[#allocation9 + $0x1b4] ss:$8 sps:$4 sm:$0xff]  }
 0x240   :  { %2302 = vmatprep.subr.bf16.mxu1 %v3792_v25  ;;  %v3886_v25 = vld [vmem:[#allocation9 + $0x1b0] ss:$8 sps:$4 sm:$0xff]  }
 0x243   :  { %2303 = vmatpush1.bf16.msra.mxu1 %v3790_v27  ;;  %v3891_v27 = vld [vmem:[#allocation9 + $0x1c4] ss:$8 sps:$4 sm:$0xff]  }
 0x244   :  { %2304 = vmatprep.subr.bf16.mxu1 %v3795_v28  ;;  %v3889_v28 = vld [vmem:[#allocation9 + $0x1c0] ss:$8 sps:$4 sm:$0xff]  }
 0x247   :  { %2305 = vmatpush1.bf16.msra.mxu1 %v3793_v31  ;;  %v3894_v31 = vld [vmem:[#allocation9 + $0x1d4] ss:$8 sps:$4 sm:$0xff]  }
 0x248   :  { %2306 = vmatprep.subr.bf16.mxu1 %v3798_v32  ;;  %v3892_v32 = vld [vmem:[#allocation9 + $0x1d0] ss:$8 sps:$4 sm:$0xff]  }
 0x24b   :  { %2307 = vmatpush1.bf16.msra.mxu1 %v3796_v33  ;;  %v3897_v33 = vld [vmem:[#allocation9 + $0x1e4] ss:$8 sps:$4 sm:$0xff]  }
 0x24c   :  { %2308 = vmatprep.subr.bf16.mxu1 %v3801_v34  ;;  %v3895_v34 = vld [vmem:[#allocation9 + $0x1e0] ss:$8 sps:$4 sm:$0xff]  }
 0x24f   :  { %2309 = vmatpush1.bf16.msra.mxu1 %v3799_v35  ;;  %v3900_v35 = vld [vmem:[#allocation9 + $0x1f4] ss:$8 sps:$4 sm:$0xff]  }
 0x250   :  { %2310 = vmatprep.subr.bf16.mxu1 %v3804_v36  ;;  %v3898_v36 = vld [vmem:[#allocation9 + $0x1f0] ss:$8 sps:$4 sm:$0xff]  }
 0x253   :  { %2311 = vmatpush1.bf16.msra.mxu1 %v3802_v37  ;;  %v704_v37 = vrot.slane %v4278_v42, %v141_v47  ;;  %v3915_v47 = vld [vmem:[#allocation10 + $0x78] sm:$0xff]   ;;  %v2398_v42 = vrot.slane %v2393_v50, %v4211_v39 }
 0x254   :  { %3352 = vmatprep.subr.bf16.mxu1 %v3901_v8 }
 0x256   :  { %2313 = vmatmul.mubr.bf16.vlgmr.msra.gmra.mrb[4].mxu1 %v4269_v60 }
 0x257   :  { %3353 = vmatpush3.bf16.msra.mxu1 %v3902_v51 }
 0x258   :  { %3354 = vmatprep.subr.bf16.mxu1 %v3903_v52 }
 0x25b   :  { %3355 = vmatpush3.bf16.msra.mxu1 %v3904_v40 }
 0x25c   :  { %3356 = vmatprep.subr.bf16.mxu1 %v3905_v57 }
 0x25f   :  { %3357 = vmatpush3.bf16.msra.mxu1 %v3906_v63 }
 0x260   :  { %3358 = vmatprep.subr.bf16.mxu1 %v3907_v7 }
 0x263   :  { %3359 = vmatpush3.bf16.msra.mxu1 %v3908_v1  ;;  %v3335_v1 = vld [vmem:[%s4309_s8] ss:$0 sm:$0xff] }
 0x264   :  { %3360 = vmatprep.subr.bf16.mxu1 %v3909_v2 }
 0x267   :  { %3361 = vmatpush3.bf16.msra.mxu1 %v3910_v4 }
 0x268   :  { %3362 = vmatprep.subr.bf16.mxu1 %v3911_v49 }
 0x26b   :  { %3363 = vmatpush3.bf16.msra.mxu1 %v3912_v9 }
 0x2b1   :  { %v2150_v30 = vpop.f32.mrb[16].mxu0 }
 0x2b2   :  { %v3375_v58 = vadd.f32 %v2150_v30, %v2028_v44  ;;  %v2152_v48 = vpop.f32.mrb[17].mxu0 }
 0x2b3   :  { %v3377_v60 = vadd.f32 %v2152_v48, %v2030_v46  ;;  %v2154_v53 = vpop.f32.mrb[18].mxu0 }
 0x2b4   :  { %v2321_v54 = vmax.f32 %v3375_v58, 0.0  ;;  %v2155_v55 = vpop.f32.mrb[19].mxu0  ;;  %v3913_v53 = vld [vmem:[#allocation10 + $0x70] sm:$0xff]  }
 0x2b5   :  { %v2322_v56 = vmax.f32 %v3377_v60, 0.0  ;;  %3364 = vmatprep.subr.bf16.mxu1 %v3913_v53  ;;  %v2402_v55 = vrot.slane %v2393_v50, %v4216_v41 }
 0x2b6   :  { %v2325_v61 = vpack.c.bf16 %v2321_v54, %v2321_v54  ;;  %v3914_v54 = vld [vmem:[#allocation10 + $0x30] sm:$0xff]  }
 0x2b7   :  { %v2326_v59 = vpack.c.bf16 %v2322_v56, %v2322_v56  ;;  %3365 = vmatpush3.bf16.msra.mxu1 %v3914_v54 }
 0x2b8   :  { %3366 = vmatprep.subr.bf16.mxu1 %v3915_v47 }
 0x2b9   :  { %2757 = vmatprep.mubr.bf16.mxu0 %v2326_v59 }
 0x2ba   :  { %2758 = vmatmul.mubr.bf16.vlgmr.msra.gmra.mrb[20].mxu0 %v2325_v61 }
 0x2bb   :  { %2767 = vmatpush1.bf16.msra.mxu0 %v3853_v29  ;;  %3367 = vmatpush3.bf16.msra.mxu1 %v3916_v38 }
 0x2bc   :  { %2768 = vmatprep.subr.bf16.mxu0 %v3858_v62 }
 0x2bf   :  { %2769 = vmatpush1.bf16.msra.mxu0 %v3856_v0 }
 0x2c0   :  { %2770 = vmatprep.subr.bf16.mxu0 %v3861_v26 }
 0x2c3   :  { %2771 = vmatpush1.bf16.msra.mxu0 %v3859_v3 }
 0x2c4   :  { %2772 = vmatprep.subr.bf16.mxu0 %v3864_v45 }
 0x2c7   :  { %2773 = vmatpush1.bf16.msra.mxu0 %v3862_v5 }
 0x2c8   :  { %2774 = vmatprep.subr.bf16.mxu0 %v3867_v6 }
 0x2cb   :  { %2775 = vmatpush1.bf16.msra.mxu0 %v3865_v10 }
 0x2cc   :  { %2776 = vmatprep.subr.bf16.mxu0 %v3870_v11 }
 0x2cf   :  { %2777 = vmatpush1.bf16.msra.mxu0 %v3868_v12 }
 0x2d0   :  { %2778 = vmatprep.subr.bf16.mxu0 %v3873_v13 }
 0x2d3   :  { %2779 = vmatpush1.bf16.msra.mxu0 %v3871_v15 }
 0x2d4   :  { %2780 = vmatprep.subr.bf16.mxu0 %v3876_v16 }
 0x2d7   :  { %2781 = vmatpush1.bf16.msra.mxu0 %v3874_v17 }
 0x2d8   :  { %2782 = vmatprep.subr.bf16.mxu0 %v3879_v18 }
 0x2db   :  { %2783 = vmatpush1.bf16.msra.mxu0 %v3877_v19 }
 0x2dc   :  { %2784 = vmatprep.subr.bf16.mxu0 %v3882_v20 }
 0x2df   :  { %2785 = vmatpush1.bf16.msra.mxu0 %v3880_v21 }
 0x2e0   :  { %2786 = vmatprep.subr.bf16.mxu0 %v3885_v22 }
 0x2e3   :  { %2787 = vmatpush1.bf16.msra.mxu0 %v3883_v23 }
 0x2e4   :  { %2788 = vmatprep.subr.bf16.mxu0 %v3888_v24 }
 0x2e7   :  { %2789 = vmatpush1.bf16.msra.mxu0 %v3886_v25 }
 0x2e8   :  { %2790 = vmatprep.subr.bf16.mxu0 %v3891_v27 }
 0x2eb   :  { %2791 = vmatpush1.bf16.msra.mxu0 %v3889_v28 }
 0x2ec   :  { %2792 = vmatprep.subr.bf16.mxu0 %v3894_v31 }
 0x2ef   :  { %2793 = vmatpush1.bf16.msra.mxu0 %v3892_v32 }
 0x2f0   :  { %2794 = vmatprep.subr.bf16.mxu0 %v3897_v33 }
 0x2f3   :  { %2795 = vmatpush1.bf16.msra.mxu0 %v3895_v34 }
 0x2f4   :  { %2796 = vmatprep.subr.bf16.mxu0 %v3900_v35 }
 0x2f7   :  { %2797 = vmatpush1.bf16.msra.mxu0 %v3898_v36 }
 0x329   :  { %v2314_v43 = vpop.f32.mrb[4].mxu1 }
 0x32a   :  { %v3378_v44 = vadd.f32 %v2314_v43, %v704_v37  ;;  %v2316_v46 = vpop.f32.mrb[5].mxu1 }
 0x32b   :  { %v3379_v30 = vadd.f32 %v2316_v46, %v708_v14  ;;  %v2318_v58 = vpop.f32.mrb[6].mxu1 }
 0x32c   :  { %v2323_v48 = vmax.f32 %v3378_v44, 0.0  ;;  %v2319_v8 = vpop.f32.mrb[7].mxu1 }
 0x32d   :  { %v2324_v51 = vmax.f32 %v3379_v30, 0.0 }
 0x32e   :  { %v2327_v60 = vpack.c.bf16 %v2323_v48, %v2323_v48 }
 0x32f   :  { %v2328_v52 = vpack.c.bf16 %v2324_v51, %v2324_v51 }
 0x331   :  { %2798 = vmatprep.mubr.bf16.mxu0 %v2328_v52 }
 0x332   :  { %2799 = vmatmul.mubr.bf16.vlgmr.msra.gmra.mrb[20].mxu0 %v2327_v60 }
 0x405   :  { %v2800_v56 = vpop.f32.mrb[20].mxu0 }
 0x406   :  { %v3380_v40 = vadd.f32 %v2800_v56, %v2398_v42  ;;  %v2802_v57 = vpop.f32.mrb[21].mxu0 }
 0x407   :  { %v3381_v59 = vadd.f32 %v2802_v57, %v2402_v55  ;;  %v2804_v29 = vpop.f32.mrb[22].mxu0 }
 0x408   :  { %v2807_v61 = vmax.f32 %v3380_v40, 0.0  ;;  %v2805_v62 = vpop.f32.mrb[23].mxu0 }
 0x409   :  { %v2808_v63 = vmax.f32 %v3381_v59, 0.0 }
 0x40a   :  { %v2809_v0 = vpack.c.bf16 %v2807_v61, %v2807_v61 }
 0x40b   :  { %v2810_v7 = vpack.c.bf16 %v2808_v63, %v2808_v63 }
 0x40d   :  { %2978 = vmatprep.mubr.bf16.mxu1 %v2810_v7 }
 0x40e   :  { %2979 = vmatmul.mubr.bf16.vlgmr.msra.gmra.mrb[8].mxu1 %v2809_v0 }
 0x4e1   :  { %v3368_v26 = vpop.f32.mrb[8].mxu1 }
 0x4e2   :  { %v3369_v39 = vpop.f32.mrb[9].mxu1 }
 0x4e3   :  { %v3370_v2 = vadd.f32 %v3369_v39, %v3368_v26  ;;  %v3371_v41 = vpop.f32.mrb[10].mxu1 }
 0x4e4   :  { %v3372_v3 = vpop.f32.mrb[11].mxu1 }
 0x4e5   :  { %v2981_v45 = vadd.f32 %v3370_v2, %v3335_v1 }
 0x4e7   :  { %2986 = vst [vmem:[%s4310_s9] sm:$0xff] %v2981_v45 }
 0x4e8   :  { %2991 = vsyncpa [#allocation3], 1 }
 0x4e9   :  { %2992 = vsyncpa [#allocation5], 1 }
 0x4ea   :  { %2993 = vsyncpa [#allocation8], 1 }
 0x4eb   :  { %2994 = vsyncpa [#allocation11], 1 }

</bundles_post_ra>
